<compile_context>
chip_gen: v6e
topology: v6e:2x2x1
jax: 0.10.0
libtpu: 0.0.40
codegen_flags: <defaults>
</compile_context>

<pallas_src>
import math

import jax
import jax.numpy as jnp
from jax.experimental import pallas as pl
from jax.experimental.pallas import tpu as pltpu

_OUT_LANES = 128  # lane-dense logits slab; sliced to num_classes in the wrapper


# ------------------------------ fused kernel --------------------------------

def _vgg_fused_kernel(x_ref, band1_ref, brow1_ref, band2_ref, brow2_ref,
                      rsel1_ref, csel1_ref, rsel2_ref, csel2_ref, avg_ref,
                      w1_ref, b1_ref, w2_ref, b2_ref,
                      o_ref, pad2_ref):
    """Whole VGG forward; everything stays in VMEM, one (N,128) store.

    x_ref     : (N, H+2, W*Cin)     H-padded, lane-dense input rows
    band?_ref : (3, W*Cin, W*Cout)  block-banded conv weights (one per kh)
    brow?_ref : (1, W*Cout)         conv bias tiled over W
    rsel?_ref : (2, N*Ho, N*H)      row-pair selection (0/1) for 2x2 max pool
    csel?_ref : (2, W*C, Wo*C)      lane-block selection (0/1) for 2x2 max pool
    avg_ref   : (N, N*H4)           per-sample averaging (entries 1/(H4*W4))
    w1_ref    : (W4*C2, nN)         first Linear weight, tiled over W4
    w2_ref    : (nN, 128)           second Linear weight padded to 128 lanes
    o_ref     : (N, 128)            lane-dense logits (first num_classes valid)
    pad2_ref  : (N, H2+2, W2*C1)    conv2 input scratch (H borders zeroed only)
    """
    f32 = jnp.float32

    def dot(a, b):
        return jnp.dot(a, b, preferred_element_type=f32)

    def conv_rows(src_ref, band_ref, brow_ref):
        # 3x3 conv as 3 banded matmuls over kh row shifts; the kw taps and the
        # W sliding window live inside the (W*Cin, W*Cout) band matrices, so
        # K=W*Cin per dot, the accumulator is lane-dense, and there is no
        # per-tap slicing or reshaping.  The three dots chain into one f32
        # accumulator (MRB in-place accumulate on v7x).
        n, hp2, lin = src_ref.shape
        h = hp2 - 2
        m = n * h
        acc = dot(src_ref[:, 0:h, :].reshape(m, lin), band_ref[0])
        acc = acc + dot(src_ref[:, 1:h + 1, :].reshape(m, lin), band_ref[1])
        acc = acc + dot(src_ref[:, 2:h + 2, :].reshape(m, lin), band_ref[2])
        return jnp.maximum(acc + brow_ref[...], 0.0)          # (n*h, W*Cout)

    def maxpool2x2(a, rsel_ref, csel_ref):
        # 2x2 max pool as selection matmuls + elementwise max: rows pick the
        # (2h, 2h+1) pair, lane blocks pick the (2w, 2w+1) pair.  No width-1
        # slices, no concats, no relayout copies; MXU is otherwise idle here.
        rmax = jnp.maximum(dot(rsel_ref[0], a), dot(rsel_ref[1], a))
        return jnp.maximum(dot(rmax, csel_ref[0]), dot(rmax, csel_ref[1]))

    # features: Conv(Cin->C1)+ReLU, MaxPool, Conv(C1->C2)+ReLU, MaxPool
    a1 = conv_rows(x_ref, band1_ref, brow1_ref)               # (N*H,  W*C1)
    p1 = maxpool2x2(a1, rsel1_ref, csel1_ref)                 # (N*H2, W2*C1)

    n2, h2p2, l2 = pad2_ref.shape
    h2 = h2p2 - 2
    zrow = jnp.zeros((n2, 1, l2), f32)
    pad2_ref[:, 0:1, :] = zrow                                # zero H borders only;
    pad2_ref[:, h2 + 1:h2 + 2, :] = zrow                      # interior overwritten
    pad2_ref[:, 1:h2 + 1, :] = p1.reshape(n2, h2, l2)
    a2 = conv_rows(pad2_ref, band2_ref, brow2_ref)            # (N*H2, W2*C2)
    p2 = maxpool2x2(a2, rsel2_ref, csel2_ref)                 # (N*H4, W4*C2)

    # AdaptiveAvgPool2d((1,1)) + flatten + classifier.  The H4 average lives in
    # avg_ref, the W4 average is folded into the tiled w1_ref, so this is just
    # three more lane-dense dots.
    pooled = dot(avg_ref[...], p2)                            # (N, W4*C2)
    hid = jnp.maximum(dot(pooled, w1_ref[...]) + b1_ref[...], 0.0)   # (N, nN)
    # TODO(synk): nn.Dropout treated as identity (eval mode); a train-mode mask
    # would use pltpu.prng_seed / pltpu.prng_random_bits.
    o_ref[...] = dot(hid, w2_ref[...]) + b2_ref[...]          # (N, 128) lane-dense


# --------------------------- wrapper-side matrices ---------------------------

def _conv_band_matrices(w, width):
    """(3,3,Cin,Cout) conv weight -> (3, width*Cin, width*Cout) band matrices.

    B[kh][wi*Cin+ci, wo*Cout+co] = w[kh, kw, ci, co] with wi = wo + kw - 1;
    out-of-range taps are simply absent, which is exactly zero-padding in W.
    """
    _, _, cin, cout = w.shape
    shift = jnp.stack([jnp.eye(width, k=1 - kw, dtype=jnp.float32)
                       for kw in range(3)])                    # (kw, wi, wo)
    b = jnp.einsum("kio,hkcd->hicod", shift, w.astype(jnp.float32))
    return b.reshape(3, width * cin, width * cout)


def _pool_matrices(n, h, w, c):
    """0/1 selection matrices implementing 2x2 max pooling as matmuls."""
    ho, wo = h // 2, w // 2
    rows = jnp.arange(n * ho)
    src_row = (rows // ho) * h + 2 * (rows % ho)
    rsel = jnp.zeros((2, n * ho, n * h), jnp.float32)
    rsel = rsel.at[0, rows, src_row].set(1.0)
    rsel = rsel.at[1, rows, src_row + 1].set(1.0)
    cols = jnp.arange(wo * c)
    src_col = 2 * (cols // c) * c + cols % c
    csel = jnp.zeros((2, w * c, wo * c), jnp.float32)
    csel = csel.at[0, src_col, cols].set(1.0)
    csel = csel.at[1, src_col + c, cols].set(1.0)
    return rsel, csel


def _avg_matrix(n, h4, w4):
    cols = jnp.arange(n * h4)
    g = jnp.zeros((n, n * h4), jnp.float32)
    return g.at[cols // h4, cols].set(1.0 / (h4 * w4))


# ------------------------------- JAX wrapper ---------------------------------

def vgg_forward(params, x_nchw):
    x = jnp.transpose(x_nchw, (0, 2, 3, 1)).astype(jnp.float32)   # NCHW -> NHWC
    n, h, w, cin = x.shape
    (w1c, b1c), (w2c, b2c) = params["features"]
    c1, c2 = w1c.shape[-1], w2c.shape[-1]
    h2, w2 = h // 2, w // 2
    h4, w4 = h2 // 2, w2 // 2
    nn_hidden = params["w1"].shape[-1]
    num_classes = params["w2"].shape[-1]

    # lane-dense input rows (lane = w*Cin + ci), one zero H row each side;
    # W padding is implicit in the band matrices.
    x_pad = jnp.pad(x.reshape(n, h, w * cin), ((0, 0), (1, 1), (0, 0)))

    band1 = _conv_band_matrices(w1c, w)                       # (3, W*Cin, W*C1)
    band2 = _conv_band_matrices(w2c, w2)                      # (3, W2*C1, W2*C2)
    brow1 = jnp.tile(b1c, w).reshape(1, w * c1)
    brow2 = jnp.tile(b2c, w2).reshape(1, w2 * c2)
    rsel1, csel1 = _pool_matrices(n, h, w, c1)
    rsel2, csel2 = _pool_matrices(n, h2, w2, c2)
    avg = _avg_matrix(n, h4, w4)
    w1t = jnp.tile(params["w1"], (w4, 1))                     # fold W4-average into FC1
    w2p = jnp.zeros((nn_hidden, _OUT_LANES), jnp.float32)
    w2p = w2p.at[:, :num_classes].set(params["w2"])
    b2p = jnp.zeros((1, _OUT_LANES), jnp.float32)
    b2p = b2p.at[:, :num_classes].set(params["b2"])

    vmem = pl.BlockSpec(memory_space=pltpu.MemorySpace.VMEM)
    out = pl.pallas_call(
        _vgg_fused_kernel,
        out_shape=jax.ShapeDtypeStruct((n, _OUT_LANES), jnp.float32),
        in_specs=[vmem] * 14,
        out_specs=vmem,
        scratch_shapes=[pltpu.VMEM((n, h2 + 2, w2 * c1), jnp.float32)],
    )(x_pad, band1, brow1, band2, brow2,
      rsel1, csel1, rsel2, csel2, avg,
      w1t, params["b1"], w2p, b2p)
    return out[:, :num_classes]


# ------------------------- deterministic parameter init ----------------------

def init_params(key, in_channels=4, cfg=(8, 16), num_classes=2, nN=256):
    feats = []
    cin = in_channels
    for cout in cfg:
        key, k1 = jax.random.split(key)
        std = math.sqrt(2.0 / (cout * 3 * 3))                 # kaiming fan_out, relu
        wt = jax.random.normal(k1, (3, 3, cin, cout), jnp.float32) * std
        b = jnp.zeros((cout,), jnp.float32)
        feats.append((wt, b))
        cin = cout
    key, k1, k2 = jax.random.split(key, 3)
    w1 = jax.random.normal(k1, (cin, nN), jnp.float32) * 0.01  # Linear: N(0, 0.01)
    b1 = jnp.zeros((1, nN), jnp.float32)
    w2 = jax.random.normal(k2, (nN, num_classes), jnp.float32) * 0.01
    b2 = jnp.zeros((1, num_classes), jnp.float32)
    return {"features": feats, "w1": w1, "b1": b1, "w2": w2, "b2": b2}


# ------------------------------ pure-JAX reference ---------------------------

def _reference_forward(params, x_nchw):
    x = jnp.transpose(x_nchw, (0, 2, 3, 1)).astype(jnp.float32)
    for wt, b in params["features"]:
        x = jax.lax.conv_general_dilated(
            x, wt, window_strides=(1, 1), padding=((1, 1), (1, 1)),
            dimension_numbers=("NHWC", "HWIO", "NHWC"))
        x = jnp.maximum(x + b, 0.0)
        x = jax.lax.reduce_window(x, -jnp.inf, jax.lax.max,
                                  (1, 2, 2, 1), (1, 2, 2, 1), "VALID")
    pooled = jnp.mean(x, axis=(1, 2))
    hid = jnp.maximum(pooled @ params["w1"] + params["b1"], 0.0)
    return hid @ params["w2"] + params["b2"]


if __name__ == "__main__":
    root = jax.random.PRNGKey(0)
    kx, kp = jax.random.split(root)
    x = jax.random.normal(kx, (2, 4, 16, 16), jnp.float32)     # NCHW, like PyTorch
    params = init_params(kp)

    out = jax.block_until_ready(jax.jit(vgg_forward)(params, x))
    assert out.shape == (2, 2), out.shape
    assert bool(jnp.all(jnp.isfinite(out)))

    ref = _reference_forward(params, x)
    err = float(jnp.max(jnp.abs(out - ref)))
    tol = 0.1 * float(jnp.max(jnp.abs(ref))) + 1e-5
    assert err <= tol, (err, tol)
    print("KERNEL_OK")
</pallas_src>

<mosaic_0001>
module attributes {stable_mosaic.version = 11 : i64} {
  func.func @_vgg_fused_kernel(%arg0: memref<2x18x64xf32, #tpu.memory_space<vmem>>, %arg1: memref<3x64x128xf32, #tpu.memory_space<vmem>>, %arg2: memref<1x128xf32, #tpu.memory_space<vmem>>, %arg3: memref<3x64x128xf32, #tpu.memory_space<vmem>>, %arg4: memref<1x128xf32, #tpu.memory_space<vmem>>, %arg5: memref<2x16x32xf32, #tpu.memory_space<vmem>>, %arg6: memref<2x128x64xf32, #tpu.memory_space<vmem>>, %arg7: memref<2x8x16xf32, #tpu.memory_space<vmem>>, %arg8: memref<2x128x64xf32, #tpu.memory_space<vmem>>, %arg9: memref<2x8xf32, #tpu.memory_space<vmem>>, %arg10: memref<64x256xf32, #tpu.memory_space<vmem>>, %arg11: memref<1x256xf32, #tpu.memory_space<vmem>>, %arg12: memref<256x128xf32, #tpu.memory_space<vmem>>, %arg13: memref<1x128xf32, #tpu.memory_space<vmem>>, %arg14: memref<2x128xf32, #tpu.memory_space<vmem>>, %arg15: memref<2x10x64xf32, #tpu.memory_space<vmem>>) attributes {dimension_semantics = [], scalar_prefetch = 0 : i64, scratch_operands = 1 : i64, tpu.core_type = #tpu.core_type<tc>} {
    %c0 = arith.constant 0 : index
    %c0_0 = arith.constant 0 : index
    %c0_1 = arith.constant 0 : index
    %0 = vector.load %arg0[%c0, %c0_0, %c0_1] : memref<2x18x64xf32, #tpu.memory_space<vmem>>, vector<2x16x64xf32>
    %1 = vector.shape_cast %0 : vector<2x16x64xf32> to vector<32x64xf32>
    %c0_2 = arith.constant 0 : index
    %c0_3 = arith.constant 0 : index
    %c0_4 = arith.constant 0 : index
    %2 = vector.load %arg1[%c0_2, %c0_3, %c0_4] : memref<3x64x128xf32, #tpu.memory_space<vmem>>, vector<1x64x128xf32>
    %3 = vector.shape_cast %2 : vector<1x64x128xf32> to vector<64x128xf32>
    %cst = arith.constant dense<0.000000e+00> : vector<32x128xf32>
    %4 = tpu.matmul %1, %3, %cst {dimension_numbers = #tpu.dot_dimension_numbers<[1], [0], [0], [1], [0, 0, 1, 1], [], []>} : vector<32x64xf32>, vector<64x128xf32>, vector<32x128xf32> -> vector<32x128xf32>
    %c0_5 = arith.constant 0 : index
    %c1 = arith.constant 1 : index
    %c0_6 = arith.constant 0 : index
    %5 = vector.load %arg0[%c0_5, %c1, %c0_6] : memref<2x18x64xf32, #tpu.memory_space<vmem>>, vector<2x16x64xf32>
    %6 = vector.shape_cast %5 : vector<2x16x64xf32> to vector<32x64xf32>
    %c1_7 = arith.constant 1 : index
    %c0_8 = arith.constant 0 : index
    %c0_9 = arith.constant 0 : index
    %7 = vector.load %arg1[%c1_7, %c0_8, %c0_9] : memref<3x64x128xf32, #tpu.memory_space<vmem>>, vector<1x64x128xf32>
    %8 = vector.shape_cast %7 : vector<1x64x128xf32> to vector<64x128xf32>
    %cst_10 = arith.constant dense<0.000000e+00> : vector<32x128xf32>
    %9 = tpu.matmul %6, %8, %cst_10 {dimension_numbers = #tpu.dot_dimension_numbers<[1], [0], [0], [1], [0, 0, 1, 1], [], []>} : vector<32x64xf32>, vector<64x128xf32>, vector<32x128xf32> -> vector<32x128xf32>
    %10 = arith.addf %4, %9 : vector<32x128xf32>
    %c0_11 = arith.constant 0 : index
    %c2 = arith.constant 2 : index
    %c0_12 = arith.constant 0 : index
    %11 = vector.load %arg0[%c0_11, %c2, %c0_12] : memref<2x18x64xf32, #tpu.memory_space<vmem>>, vector<2x16x64xf32>
    %12 = vector.shape_cast %11 : vector<2x16x64xf32> to vector<32x64xf32>
    %c2_13 = arith.constant 2 : index
    %c0_14 = arith.constant 0 : index
    %c0_15 = arith.constant 0 : index
    %13 = vector.load %arg1[%c2_13, %c0_14, %c0_15] : memref<3x64x128xf32, #tpu.memory_space<vmem>>, vector<1x64x128xf32>
    %14 = vector.shape_cast %13 : vector<1x64x128xf32> to vector<64x128xf32>
    %cst_16 = arith.constant dense<0.000000e+00> : vector<32x128xf32>
    %15 = tpu.matmul %12, %14, %cst_16 {dimension_numbers = #tpu.dot_dimension_numbers<[1], [0], [0], [1], [0, 0, 1, 1], [], []>} : vector<32x64xf32>, vector<64x128xf32>, vector<32x128xf32> -> vector<32x128xf32>
    %16 = arith.addf %10, %15 : vector<32x128xf32>
    %c0_17 = arith.constant 0 : index
    %c0_18 = arith.constant 0 : index
    %17 = vector.load %arg2[%c0_17, %c0_18] : memref<1x128xf32, #tpu.memory_space<vmem>>, vector<1x128xf32>
    %18 = vector.broadcast %17 : vector<1x128xf32> to vector<32x128xf32>
    %19 = arith.addf %16, %18 : vector<32x128xf32>
    %cst_19 = arith.constant 0.000000e+00 : f32
    %20 = vector.broadcast %cst_19 : f32 to vector<32x128xf32>
    %21 = arith.maximumf %19, %20 : vector<32x128xf32>
    %c0_20 = arith.constant 0 : index
    %c0_21 = arith.constant 0 : index
    %c0_22 = arith.constant 0 : index
    %22 = vector.load %arg5[%c0_20, %c0_21, %c0_22] : memref<2x16x32xf32, #tpu.memory_space<vmem>>, vector<1x16x32xf32>
    %23 = vector.shape_cast %22 : vector<1x16x32xf32> to vector<16x32xf32>
    %cst_23 = arith.constant dense<0.000000e+00> : vector<16x128xf32>
    %24 = tpu.matmul %23, %21, %cst_23 {dimension_numbers = #tpu.dot_dimension_numbers<[1], [0], [0], [1], [0, 0, 1, 1], [], []>} : vector<16x32xf32>, vector<32x128xf32>, vector<16x128xf32> -> vector<16x128xf32>
    %c1_24 = arith.constant 1 : index
    %c0_25 = arith.constant 0 : index
    %c0_26 = arith.constant 0 : index
    %25 = vector.load %arg5[%c1_24, %c0_25, %c0_26] : memref<2x16x32xf32, #tpu.memory_space<vmem>>, vector<1x16x32xf32>
    %26 = vector.shape_cast %25 : vector<1x16x32xf32> to vector<16x32xf32>
    %cst_27 = arith.constant dense<0.000000e+00> : vector<16x128xf32>
    %27 = tpu.matmul %26, %21, %cst_27 {dimension_numbers = #tpu.dot_dimension_numbers<[1], [0], [0], [1], [0, 0, 1, 1], [], []>} : vector<16x32xf32>, vector<32x128xf32>, vector<16x128xf32> -> vector<16x128xf32>
    %28 = arith.maximumf %24, %27 : vector<16x128xf32>
    %c0_28 = arith.constant 0 : index
    %c0_29 = arith.constant 0 : index
    %c0_30 = arith.constant 0 : index
    %29 = vector.load %arg6[%c0_28, %c0_29, %c0_30] : memref<2x128x64xf32, #tpu.memory_space<vmem>>, vector<1x128x64xf32>
    %30 = vector.shape_cast %29 : vector<1x128x64xf32> to vector<128x64xf32>
    %cst_31 = arith.constant dense<0.000000e+00> : vector<16x64xf32>
    %31 = tpu.matmul %28, %30, %cst_31 {dimension_numbers = #tpu.dot_dimension_numbers<[1], [0], [0], [1], [0, 0, 1, 1], [], []>} : vector<16x128xf32>, vector<128x64xf32>, vector<16x64xf32> -> vector<16x64xf32>
    %c1_32 = arith.constant 1 : index
    %c0_33 = arith.constant 0 : index
    %c0_34 = arith.constant 0 : index
    %32 = vector.load %arg6[%c1_32, %c0_33, %c0_34] : memref<2x128x64xf32, #tpu.memory_space<vmem>>, vector<1x128x64xf32>
    %33 = vector.shape_cast %32 : vector<1x128x64xf32> to vector<128x64xf32>
    %cst_35 = arith.constant dense<0.000000e+00> : vector<16x64xf32>
    %34 = tpu.matmul %28, %33, %cst_35 {dimension_numbers = #tpu.dot_dimension_numbers<[1], [0], [0], [1], [0, 0, 1, 1], [], []>} : vector<16x128xf32>, vector<128x64xf32>, vector<16x64xf32> -> vector<16x64xf32>
    %35 = arith.maximumf %31, %34 : vector<16x64xf32>
    %cst_36 = arith.constant 0.000000e+00 : f32
    %36 = vector.broadcast %cst_36 : f32 to vector<2x1x64xf32>
    %c0_37 = arith.constant 0 : index
    %c0_38 = arith.constant 0 : index
    %c0_39 = arith.constant 0 : index
    %37 = vector.load %arg15[%c0_37, %c0_38, %c0_39] : memref<2x10x64xf32, #tpu.memory_space<vmem>>, vector<2x1x64xf32>
    tpu.vector_store %arg15[%c0_37, %c0_38, %c0_39], %36 {strides = array<i32>} : memref<2x10x64xf32, #tpu.memory_space<vmem>>, vector<2x1x64xf32>,
    %c0_40 = arith.constant 0 : index
    %c9 = arith.constant 9 : index
    %c0_41 = arith.constant 0 : index
    %38 = vector.load %arg15[%c0_40, %c9, %c0_41] : memref<2x10x64xf32, #tpu.memory_space<vmem>>, vector<2x1x64xf32>
    tpu.vector_store %arg15[%c0_40, %c9, %c0_41], %36 {strides = array<i32>} : memref<2x10x64xf32, #tpu.memory_space<vmem>>, vector<2x1x64xf32>,
    %39 = vector.shape_cast %35 : vector<16x64xf32> to vector<2x8x64xf32>
    %c0_42 = arith.constant 0 : index
    %c1_43 = arith.constant 1 : index
    %c0_44 = arith.constant 0 : index
    %40 = vector.load %arg15[%c0_42, %c1_43, %c0_44] : memref<2x10x64xf32, #tpu.memory_space<vmem>>, vector<2x8x64xf32>
    tpu.vector_store %arg15[%c0_42, %c1_43, %c0_44], %39 {strides = array<i32>} : memref<2x10x64xf32, #tpu.memory_space<vmem>>, vector<2x8x64xf32>,
    %c0_45 = arith.constant 0 : index
    %c0_46 = arith.constant 0 : index
    %c0_47 = arith.constant 0 : index
    %41 = vector.load %arg15[%c0_45, %c0_46, %c0_47] : memref<2x10x64xf32, #tpu.memory_space<vmem>>, vector<2x8x64xf32>
    %42 = vector.shape_cast %41 : vector<2x8x64xf32> to vector<16x64xf32>
    %c0_48 = arith.constant 0 : index
    %c0_49 = arith.constant 0 : index
    %c0_50 = arith.constant 0 : index
    %43 = vector.load %arg3[%c0_48, %c0_49, %c0_50] : memref<3x64x128xf32, #tpu.memory_space<vmem>>, vector<1x64x128xf32>
    %44 = vector.shape_cast %43 : vector<1x64x128xf32> to vector<64x128xf32>
    %cst_51 = arith.constant dense<0.000000e+00> : vector<16x128xf32>
    %45 = tpu.matmul %42, %44, %cst_51 {dimension_numbers = #tpu.dot_dimension_numbers<[1], [0], [0], [1], [0, 0, 1, 1], [], []>} : vector<16x64xf32>, vector<64x128xf32>, vector<16x128xf32> -> vector<16x128xf32>
    %c0_52 = arith.constant 0 : index
    %c1_53 = arith.constant 1 : index
    %c0_54 = arith.constant 0 : index
    %46 = vector.load %arg15[%c0_52, %c1_53, %c0_54] : memref<2x10x64xf32, #tpu.memory_space<vmem>>, vector<2x8x64xf32>
    %47 = vector.shape_cast %46 : vector<2x8x64xf32> to vector<16x64xf32>
    %c1_55 = arith.constant 1 : index
    %c0_56 = arith.constant 0 : index
    %c0_57 = arith.constant 0 : index
    %48 = vector.load %arg3[%c1_55, %c0_56, %c0_57] : memref<3x64x128xf32, #tpu.memory_space<vmem>>, vector<1x64x128xf32>
    %49 = vector.shape_cast %48 : vector<1x64x128xf32> to vector<64x128xf32>
    %cst_58 = arith.constant dense<0.000000e+00> : vector<16x128xf32>
    %50 = tpu.matmul %47, %49, %cst_58 {dimension_numbers = #tpu.dot_dimension_numbers<[1], [0], [0], [1], [0, 0, 1, 1], [], []>} : vector<16x64xf32>, vector<64x128xf32>, vector<16x128xf32> -> vector<16x128xf32>
    %51 = arith.addf %45, %50 : vector<16x128xf32>
    %c0_59 = arith.constant 0 : index
    %c2_60 = arith.constant 2 : index
    %c0_61 = arith.constant 0 : index
    %52 = vector.load %arg15[%c0_59, %c2_60, %c0_61] : memref<2x10x64xf32, #tpu.memory_space<vmem>>, vector<2x8x64xf32>
    %53 = vector.shape_cast %52 : vector<2x8x64xf32> to vector<16x64xf32>
    %c2_62 = arith.constant 2 : index
    %c0_63 = arith.constant 0 : index
    %c0_64 = arith.constant 0 : index
    %54 = vector.load %arg3[%c2_62, %c0_63, %c0_64] : memref<3x64x128xf32, #tpu.memory_space<vmem>>, vector<1x64x128xf32>
    %55 = vector.shape_cast %54 : vector<1x64x128xf32> to vector<64x128xf32>
    %cst_65 = arith.constant dense<0.000000e+00> : vector<16x128xf32>
    %56 = tpu.matmul %53, %55, %cst_65 {dimension_numbers = #tpu.dot_dimension_numbers<[1], [0], [0], [1], [0, 0, 1, 1], [], []>} : vector<16x64xf32>, vector<64x128xf32>, vector<16x128xf32> -> vector<16x128xf32>
    %57 = arith.addf %51, %56 : vector<16x128xf32>
    %c0_66 = arith.constant 0 : index
    %c0_67 = arith.constant 0 : index
    %58 = vector.load %arg4[%c0_66, %c0_67] : memref<1x128xf32, #tpu.memory_space<vmem>>, vector<1x128xf32>
    %59 = vector.broadcast %58 : vector<1x128xf32> to vector<16x128xf32>
    %60 = arith.addf %57, %59 : vector<16x128xf32>
    %cst_68 = arith.constant 0.000000e+00 : f32
    %61 = vector.broadcast %cst_68 : f32 to vector<16x128xf32>
    %62 = arith.maximumf %60, %61 : vector<16x128xf32>
    %c0_69 = arith.constant 0 : index
    %c0_70 = arith.constant 0 : index
    %c0_71 = arith.constant 0 : index
    %63 = vector.load %arg7[%c0_69, %c0_70, %c0_71] : memref<2x8x16xf32, #tpu.memory_space<vmem>>, vector<1x8x16xf32>
    %64 = vector.shape_cast %63 : vector<1x8x16xf32> to vector<8x16xf32>
    %cst_72 = arith.constant dense<0.000000e+00> : vector<8x128xf32>
    %65 = tpu.matmul %64, %62, %cst_72 {dimension_numbers = #tpu.dot_dimension_numbers<[1], [0], [0], [1], [0, 0, 1, 1], [], []>} : vector<8x16xf32>, vector<16x128xf32>, vector<8x128xf32> -> vector<8x128xf32>
    %c1_73 = arith.constant 1 : index
    %c0_74 = arith.constant 0 : index
    %c0_75 = arith.constant 0 : index
    %66 = vector.load %arg7[%c1_73, %c0_74, %c0_75] : memref<2x8x16xf32, #tpu.memory_space<vmem>>, vector<1x8x16xf32>
    %67 = vector.shape_cast %66 : vector<1x8x16xf32> to vector<8x16xf32>
    %cst_76 = arith.constant dense<0.000000e+00> : vector<8x128xf32>
    %68 = tpu.matmul %67, %62, %cst_76 {dimension_numbers = #tpu.dot_dimension_numbers<[1], [0], [0], [1], [0, 0, 1, 1], [], []>} : vector<8x16xf32>, vector<16x128xf32>, vector<8x128xf32> -> vector<8x128xf32>
    %69 = arith.maximumf %65, %68 : vector<8x128xf32>
    %c0_77 = arith.constant 0 : index
    %c0_78 = arith.constant 0 : index
    %c0_79 = arith.constant 0 : index
    %70 = vector.load %arg8[%c0_77, %c0_78, %c0_79] : memref<2x128x64xf32, #tpu.memory_space<vmem>>, vector<1x128x64xf32>
    %71 = vector.shape_cast %70 : vector<1x128x64xf32> to vector<128x64xf32>
    %cst_80 = arith.constant dense<0.000000e+00> : vector<8x64xf32>
    %72 = tpu.matmul %69, %71, %cst_80 {dimension_numbers = #tpu.dot_dimension_numbers<[1], [0], [0], [1], [0, 0, 1, 1], [], []>} : vector<8x128xf32>, vector<128x64xf32>, vector<8x64xf32> -> vector<8x64xf32>
    %c1_81 = arith.constant 1 : index
    %c0_82 = arith.constant 0 : index
    %c0_83 = arith.constant 0 : index
    %73 = vector.load %arg8[%c1_81, %c0_82, %c0_83] : memref<2x128x64xf32, #tpu.memory_space<vmem>>, vector<1x128x64xf32>
    %74 = vector.shape_cast %73 : vector<1x128x64xf32> to vector<128x64xf32>
    %cst_84 = arith.constant dense<0.000000e+00> : vector<8x64xf32>
    %75 = tpu.matmul %69, %74, %cst_84 {dimension_numbers = #tpu.dot_dimension_numbers<[1], [0], [0], [1], [0, 0, 1, 1], [], []>} : vector<8x128xf32>, vector<128x64xf32>, vector<8x64xf32> -> vector<8x64xf32>
    %76 = arith.maximumf %72, %75 : vector<8x64xf32>
    %c0_85 = arith.constant 0 : index
    %c0_86 = arith.constant 0 : index
    %77 = vector.load %arg9[%c0_85, %c0_86] : memref<2x8xf32, #tpu.memory_space<vmem>>, vector<2x8xf32>
    %cst_87 = arith.constant dense<0.000000e+00> : vector<2x64xf32>
    %78 = tpu.matmul %77, %76, %cst_87 {dimension_numbers = #tpu.dot_dimension_numbers<[1], [0], [0], [1], [0, 0, 1, 1], [], []>} : vector<2x8xf32>, vector<8x64xf32>, vector<2x64xf32> -> vector<2x64xf32>
    %c0_88 = arith.constant 0 : index
    %c0_89 = arith.constant 0 : index
    %79 = vector.load %arg10[%c0_88, %c0_89] : memref<64x256xf32, #tpu.memory_space<vmem>>, vector<64x256xf32>
    %cst_90 = arith.constant dense<0.000000e+00> : vector<2x256xf32>
    %80 = tpu.matmul %78, %79, %cst_90 {dimension_numbers = #tpu.dot_dimension_numbers<[1], [0], [0], [1], [0, 0, 1, 1], [], []>} : vector<2x64xf32>, vector<64x256xf32>, vector<2x256xf32> -> vector<2x256xf32>
    %c0_91 = arith.constant 0 : index
    %c0_92 = arith.constant 0 : index
    %81 = vector.load %arg11[%c0_91, %c0_92] : memref<1x256xf32, #tpu.memory_space<vmem>>, vector<1x256xf32>
    %82 = vector.broadcast %81 : vector<1x256xf32> to vector<2x256xf32>
    %83 = arith.addf %80, %82 : vector<2x256xf32>
    %cst_93 = arith.constant 0.000000e+00 : f32
    %84 = vector.broadcast %cst_93 : f32 to vector<2x256xf32>
    %85 = arith.maximumf %83, %84 : vector<2x256xf32>
    %c0_94 = arith.constant 0 : index
    %c0_95 = arith.constant 0 : index
    %86 = vector.load %arg12[%c0_94, %c0_95] : memref<256x128xf32, #tpu.memory_space<vmem>>, vector<256x128xf32>
    %cst_96 = arith.constant dense<0.000000e+00> : vector<2x128xf32>
    %87 = tpu.matmul %85, %86, %cst_96 {dimension_numbers = #tpu.dot_dimension_numbers<[1], [0], [0], [1], [0, 0, 1, 1], [], []>} : vector<2x256xf32>, vector<256x128xf32>, vector<2x128xf32> -> vector<2x128xf32>
    %c0_97 = arith.constant 0 : index
    %c0_98 = arith.constant 0 : index
    %88 = vector.load %arg13[%c0_97, %c0_98] : memref<1x128xf32, #tpu.memory_space<vmem>>, vector<1x128xf32>
    %89 = vector.broadcast %88 : vector<1x128xf32> to vector<2x128xf32>
    %90 = arith.addf %87, %89 : vector<2x128xf32>
    %c0_99 = arith.constant 0 : index
    %c0_100 = arith.constant 0 : index
    %91 = vector.load %arg14[%c0_99, %c0_100] : memref<2x128xf32, #tpu.memory_space<vmem>>, vector<2x128xf32>
    tpu.vector_store %arg14[%c0_99, %c0_100], %90 {strides = array<i32>} : memref<2x128xf32, #tpu.memory_space<vmem>>, vector<2x128xf32>,
    return
  }
}

</mosaic_0001>

<bundles_post_ra>
// kernel: tile.18
= control target key start
LH: loop header
LB: loop body
LE: loop exit
PB: predicated region body
PF: predicated region fallthrough
CT: control target
= control target key end

     0   :  { %s28_s0 = inlined_call_operand.vmem [shape: f32[8], index: 0, kind: input, shape index: {}]   ;;  %s29_s1 = inlined_call_operand.vmem [shape: f32[16,8], index: 1, kind: output, shape index: {}]  }
   0x1   :  { %v4_v0 = vld [vmem:[%s28_s0] ss:$0 sm:$0xff] }
   0x2   :  { %5 = vst [vmem:[%s29_s1] sm:$0xff] %v4_v0  ;;  %8 = vst [vmem:[%s29_s1 + $0x8] sm:$0xff] %v4_v0 }

// kernel: tile.19
= control target key start
LH: loop header
LB: loop body
LE: loop exit
PB: predicated region body
PF: predicated region fallthrough
CT: control target
= control target key end

     0   :  { %s133_s10 = smov 120   ;;  %s134_s11 = smov 104   ;;  %vm3_vm0 = vcmask 64512   ;;  %vm9_vm1 = vcmask 1048512   ;;  %vm15_vm2 = vcmask 982912   ;;  %vm21_vm3 = vcmask 917312   ;;  %s209_s0 = inlined_call_operand.vmem [shape: f32[16,8], index: 0, kind: input, shape index: {}]   ;;  %s210_s1 = inlined_call_operand.vmem [shape: f32[1,128], index: 1, kind: output, shape index: {}]  }
   0x1   :  { %v103_v0 = vld [vmem:[%s209_s0 + $0xf] sm:$0x1]   ;;  %v105_v1 = vld [vmem:[%s209_s0 + $0xd] sm:$0x1]   ;;  %v104_v2 = vld [vmem:[%s209_s0 + $0xe] sm:$0x1]  }
   0x2   :  { %7 = vrot.lane.b32.xlu0 %v103_v0, %s133_s10  ;;  %19 = vrot.lane.b32.xlu1 %v105_v1, %s134_s11  ;;  %v106_v3 = vld [vmem:[%s209_s0 + $0xc] sm:$0x1]   ;;  %s135_s16 = smov 112   ;;  %s136_s17 = smov 96   ;;  %v107_v4 = vld [vmem:[%s209_s0 + $0xb] sm:$0x1]  }
   0x3   :  { %v108_v5 = vld [vmem:[%s209_s0 + $0xa] sm:$0x1]   ;;  %v2_v6 = vld [vmem:[%s209_s0] sm:$0x1]   ;;  %s137_s24 = smov 88   ;;  %s138_s25 = smov 80  }
   0x4   :  { %4 = vst.msk [vmem:[#allocation0] sm:$0x1] %vm3_vm0, %v2_v6   ;;  %v109_v7 = vld [vmem:[%s209_s0 + $0x9] sm:$0x1]   ;;  %v110_v8 = vld [vmem:[%s209_s0 + $0x8] sm:$0x1]  }
   0x5   :  { %s139_s30 = smov 72   ;;  %s140_s2 = smov 64   ;;  %v111_v9 = vld [vmem:[%s209_s0 + $0x7] sm:$0x1]   ;;  %v112_v10 = vld [vmem:[%s209_s0 + $0x6] sm:$0x1]  }
   0x6   :  { %13 = vrot.lane.b32.xlu0 %v104_v2, %s135_s16  ;;  %25 = vrot.lane.b32.xlu1 %v106_v3, %s136_s17  ;;  %s141_s7 = smov 56   ;;  %s142_s8 = smov 48   ;;  %v113_v11 = vld [vmem:[%s209_s0 + $0x5] sm:$0x1]   ;;  %v114_v12 = vld [vmem:[%s209_s0 + $0x4] sm:$0x1]  }
   0x7   :  { %s143_s13 = smov 40   ;;  %s144_s14 = smov 32   ;;  %v115_v13 = vld [vmem:[%s209_s0 + $0x3] sm:$0x1]   ;;  %v116_v14 = vld [vmem:[%s209_s0 + $0x2] sm:$0x1]  }
   0x8   :  { %s145_s19 = smov 24   ;;  %s146_s20 = smov 16   ;;  %v117_v15 = vld [vmem:[%s209_s0 + $0x1] sm:$0x1]   ;;  %vm27_vm4 = vcmask 851712   ;;  %vm33_vm5 = vcmask 786112  }
   0x9   :  { %s147_s0 = smov 8   ;;  %vm39_vm6 = vcmask 720512   ;;  %vm45_vm7 = vcmask 654912   ;;  %vm51_vm8 = vcmask 589312   ;;  %vm57_vm9 = vcmask 523712  }
   0xa   :  { %31 = vrot.lane.b32.xlu0 %v107_v4, %s137_s24  ;;  %37 = vrot.lane.b32.xlu1 %v108_v5, %s138_s25  ;;  %vm63_vm10 = vcmask 458112   ;;  %vm69_vm11 = vcmask 392512   ;;  %vm75_vm12 = vcmask 326912   ;;  %vm81_vm13 = vcmask 261312  }
   0xb   :  { %vm87_vm14 = vcmask 195712   ;;  %vm93_vm15 = vcmask 130112  }
   0xe   :  { %43 = vrot.lane.b32.xlu0 %v109_v7, %s139_s30  ;;  %49 = vrot.lane.b32.xlu1 %v110_v8, %s140_s2 }
  0x12   :  { %55 = vrot.lane.b32.xlu0 %v111_v9, %s141_s7  ;;  %61 = vrot.lane.b32.xlu1 %v112_v10, %s142_s8 }
  0x16   :  { %67 = vrot.lane.b32.xlu0 %v113_v11, %s143_s13  ;;  %73 = vrot.lane.b32.xlu1 %v114_v12, %s144_s14 }
  0x1a   :  { %79 = vrot.lane.b32.xlu0 %v115_v13, %s145_s19  ;;  %85 = vrot.lane.b32.xlu1 %v116_v14, %s146_s20 }
  0x1e   :  { %91 = vrot.lane.b32.xlu0 %v117_v15, %s147_s0 }
  0x74   :  { %v8_v16 = vpop.permute.xlu0 %7   ;;  %v20_v17 = vpop.permute.xlu1 %19  }
  0x75   :  { %10 = vst.msk [vmem:[#allocation0] sm:$0x1] %vm9_vm1, %v8_v16  }
  0x78   :  { %v14_v18 = vpop.permute.xlu0 %13   ;;  %v26_v19 = vpop.permute.xlu1 %25  }
  0x79   :  { %16 = vst.msk [vmem:[#allocation0] sm:$0x1] %vm15_vm2, %v14_v18  }
  0x7a   :  { %22 = vst.msk [vmem:[#allocation0] sm:$0x1] %vm21_vm3, %v20_v17  }
  0x7b   :  { %28 = vst.msk [vmem:[#allocation0] sm:$0x1] %vm27_vm4, %v26_v19  }
  0x7c   :  { %v32_v20 = vpop.permute.xlu0 %31   ;;  %v38_v21 = vpop.permute.xlu1 %37  }
  0x7d   :  { %34 = vst.msk [vmem:[#allocation0] sm:$0x1] %vm33_vm5, %v32_v20  }
  0x7e   :  { %40 = vst.msk [vmem:[#allocation0] sm:$0x1] %vm39_vm6, %v38_v21  }
  0x80   :  { %v44_v22 = vpop.permute.xlu0 %43   ;;  %v50_v23 = vpop.permute.xlu1 %49  }
  0x81   :  { %46 = vst.msk [vmem:[#allocation0] sm:$0x1] %vm45_vm7, %v44_v22  }
  0x82   :  { %52 = vst.msk [vmem:[#allocation0] sm:$0x1] %vm51_vm8, %v50_v23  }
  0x84   :  { %v56_v24 = vpop.permute.xlu0 %55   ;;  %v62_v25 = vpop.permute.xlu1 %61  }
  0x85   :  { %58 = vst.msk [vmem:[#allocation0] sm:$0x1] %vm57_vm9, %v56_v24  }
  0x86   :  { %64 = vst.msk [vmem:[#allocation0] sm:$0x1] %vm63_vm10, %v62_v25  }
  0x88   :  { %v68_v26 = vpop.permute.xlu0 %67   ;;  %v74_v27 = vpop.permute.xlu1 %73  }
  0x89   :  { %70 = vst.msk [vmem:[#allocation0] sm:$0x1] %vm69_vm11, %v68_v26  }
  0x8a   :  { %76 = vst.msk [vmem:[#allocation0] sm:$0x1] %vm75_vm12, %v74_v27  }
  0x8c   :  { %v80_v28 = vpop.permute.xlu0 %79   ;;  %v86_v29 = vpop.permute.xlu1 %85  }
  0x8d   :  { %82 = vst.msk [vmem:[#allocation0] sm:$0x1] %vm81_vm13, %v80_v28  }
  0x8e   :  { %88 = vst.msk [vmem:[#allocation0] sm:$0x1] %vm87_vm14, %v86_v29  }
  0x90   :  { %v92_v30 = vpop.permute.xlu0 %91  }
  0x91   :  { %94 = vst.msk [vmem:[#allocation0] sm:$0x1] %vm93_vm15, %v92_v30  }
  0x98   :  { %v99_v31 = vld [vmem:[#allocation0] sm:$0x1] }
  0x99   :  { %102 = vst [vmem:[%s210_s1] sm:$0x1] %v99_v31 }

// kernel: tile.23
= control target key start
LH: loop header
LB: loop body
LE: loop exit
PB: predicated region body
PF: predicated region fallthrough
CT: control target
= control target key end

     0   :  { %s22_s0 = inlined_call_operand.vmem [shape: f32[16], index: 0, kind: input, shape index: {}]   ;;  %s23_s1 = inlined_call_operand.vmem [shape: f32[8,16], index: 1, kind: output, shape index: {}]  }
   0x1   :  { %v4_v0 = vld [vmem:[%s22_s0] ss:$0 sm:$0xff] }
   0x2   :  { %5 = vst [vmem:[%s23_s1] sm:$0xff] %v4_v0 }

// kernel: tile.24
= control target key start
LH: loop header
LB: loop body
LE: loop exit
PB: predicated region body
PF: predicated region fallthrough
CT: control target
= control target key end

     0   :  { %s69_s10 = smov 112   ;;  %s70_s11 = smov 80   ;;  %vm3_vm0 = vcmask 130048   ;;  %vm9_vm1 = vcmask 1048448   ;;  %vm15_vm2 = vcmask 917248   ;;  %vm21_vm3 = vcmask 786048   ;;  %s113_s0 = inlined_call_operand.vmem [shape: f32[8,16], index: 0, kind: input, shape index: {}]   ;;  %s114_s1 = inlined_call_operand.vmem [shape: f32[1,128], index: 1, kind: output, shape index: {}]  }
   0x1   :  { %v55_v0 = vld [vmem:[%s113_s0 + $0x7] sm:$0x1]   ;;  %v57_v1 = vld [vmem:[%s113_s0 + $0x5] sm:$0x1]   ;;  %v56_v2 = vld [vmem:[%s113_s0 + $0x6] sm:$0x1]  }
   0x2   :  { %7 = vrot.lane.b32.xlu0 %v55_v0, %s69_s10  ;;  %19 = vrot.lane.b32.xlu1 %v57_v1, %s70_s11  ;;  %v58_v3 = vld [vmem:[%s113_s0 + $0x4] sm:$0x1]   ;;  %v2_v4 = vld [vmem:[%s113_s0] sm:$0x1]   ;;  %s71_s18 = smov 96   ;;  %s72_s19 = smov 64  }
   0x3   :  { %4 = vst.msk [vmem:[#allocation0] sm:$0x1] %vm3_vm0, %v2_v4   ;;  %v59_v5 = vld [vmem:[%s113_s0 + $0x3] sm:$0x1]   ;;  %v60_v6 = vld [vmem:[%s113_s0 + $0x2] sm:$0x1]  }
   0x4   :  { %s73_s24 = smov 48   ;;  %s74_s25 = smov 32   ;;  %v61_v7 = vld [vmem:[%s113_s0 + $0x1] sm:$0x1]   ;;  %vm27_vm4 = vcmask 654848   ;;  %vm33_vm5 = vcmask 523648  }
   0x5   :  { %s75_s0 = smov 16   ;;  %vm39_vm6 = vcmask 392448   ;;  %vm45_vm7 = vcmask 261248  }
   0x6   :  { %13 = vrot.lane.b32.xlu0 %v56_v2, %s71_s18  ;;  %25 = vrot.lane.b32.xlu1 %v58_v3, %s72_s19 }
   0xa   :  { %31 = vrot.lane.b32.xlu0 %v59_v5, %s73_s24  ;;  %37 = vrot.lane.b32.xlu1 %v60_v6, %s74_s25 }
   0xe   :  { %43 = vrot.lane.b32.xlu0 %v61_v7, %s75_s0 }
  0x74   :  { %v8_v8 = vpop.permute.xlu0 %7   ;;  %v20_v9 = vpop.permute.xlu1 %19  }
  0x75   :  { %10 = vst.msk [vmem:[#allocation0] sm:$0x1] %vm9_vm1, %v8_v8  }
  0x78   :  { %v14_v10 = vpop.permute.xlu0 %13   ;;  %v26_v11 = vpop.permute.xlu1 %25  }
  0x79   :  { %16 = vst.msk [vmem:[#allocation0] sm:$0x1] %vm15_vm2, %v14_v10  }
  0x7a   :  { %22 = vst.msk [vmem:[#allocation0] sm:$0x1] %vm21_vm3, %v20_v9  }
  0x7b   :  { %28 = vst.msk [vmem:[#allocation0] sm:$0x1] %vm27_vm4, %v26_v11  }
  0x7c   :  { %v32_v12 = vpop.permute.xlu0 %31   ;;  %v38_v13 = vpop.permute.xlu1 %37  }
  0x7d   :  { %34 = vst.msk [vmem:[#allocation0] sm:$0x1] %vm33_vm5, %v32_v12  }
  0x7e   :  { %40 = vst.msk [vmem:[#allocation0] sm:$0x1] %vm39_vm6, %v38_v13  }
  0x80   :  { %v44_v14 = vpop.permute.xlu0 %43  }
  0x81   :  { %46 = vst.msk [vmem:[#allocation0] sm:$0x1] %vm45_vm7, %v44_v14  }
  0x88   :  { %v51_v15 = vld [vmem:[#allocation0] sm:$0x1] }
  0x89   :  { %54 = vst [vmem:[%s114_s1] sm:$0x1] %v51_v15 }

// kernel: vgg_forward.1
= control target key start
LH: loop header
LB: loop body
LE: loop exit
PB: predicated region body
PF: predicated region fallthrough
CT: control target
= control target key end

     0   :  { %vm73_vm0 = vcmask 523264   ;;  %s2998_s0 = inlined_call_operand.vmem [shape: f32[2,18,64], index: 0, kind: input, shape index: {}]   ;;  %s2999_s1 = inlined_call_operand.vmem [shape: f32[3,64,128], index: 1, kind: input, shape index: {}]   ;;  %s3000_s2 = inlined_call_operand.vmem [shape: f32[1,128], index: 2, kind: input, shape index: {}]   ;;  %s3001_s3 = inlined_call_operand.vmem [shape: f32[3,64,128], index: 3, kind: input, shape index: {}]   ;;  %s3002_s4 = inlined_call_operand.vmem [shape: f32[1,128], index: 4, kind: input, shape index: {}]   ;;  %s3003_s5 = inlined_call_operand.vmem [shape: f32[2,16,32], index: 5, kind: input, shape index: {}]   ;;  %s3004_s6 = inlined_call_operand.vmem [shape: f32[2,128,64], index: 6, kind: input, shape index: {}]   ;;  %s3005_s7 = inlined_call_operand.vmem [shape: f32[2,8,16], index: 7, kind: input, shape index: {}]   ;;  %s3006_s8 = inlined_call_operand.vmem [shape: f32[2,128,64], index: 8, kind: input, shape index: {}]   ;;  %s3007_s9 = inlined_call_operand.vmem [shape: f32[2,8], index: 9, kind: input, shape index: {}]   ;;  %s3008_s10 = inlined_call_operand.vmem [shape: f32[64,256], index: 10, kind: input, shape index: {}]   ;;  %s3009_s11 = inlined_call_operand.vmem [shape: f32[1,256], index: 11, kind: input, shape index: {}]   ;;  %s3010_s12 = inlined_call_operand.vmem [shape: f32[256,128], index: 12, kind: input, shape index: {}]   ;;  %s3011_s13 = inlined_call_operand.vmem [shape: f32[1,128], index: 13, kind: input, shape index: {}]   ;;  %s3012_s14 = inlined_call_operand.hbm [shape: f32[2,128], index: 14, kind: output, shape index: {}]  }
   0x1   :  { %v1682_v0 = vld [vmem:[%s2999_s1 + $0x78] sm:$0xff]  ;;  %v1681_v1 = vld [vmem:[%s2999_s1 + $0x70] sm:$0xff]  ;;  %v1680_v2 = vld [vmem:[%s2999_s1 + $0x68] sm:$0xff] }
   0x2   :  { %1962 = vmatprep.subr.mxu1 %v1682_v0  ;;  %v60_v3 = vld [vmem:[%s2998_s0 + $0x1] sm:$0xff]  ;;  %v1698_v4 = vld [vmem:[%s2999_s1 + $0xb8] sm:$0xff]  ;;  %v1697_v6 = vld [vmem:[%s2999_s1 + $0xb0] sm:$0xff] }
   0x3   :  { %1963 = vmatpush3.msra.mxu1 %v1682_v0  ;;  %1978 = vmatprep.mubr.msk.f32.mxu1 %vm73_vm0, %v60_v3  ;;  %v1679_v5 = vld [vmem:[%s2999_s1 + $0x60] sm:$0xff]  ;;  %v1696_v7 = vld [vmem:[%s2999_s1 + $0xa8] sm:$0xff]  ;;  %v1678_v8 = vld [vmem:[%s2999_s1 + $0x58] sm:$0xff] }
   0x4   :  { %1964 = vmatprep.subr.mxu1 %v1681_v1  ;;  %2006 = vmatprep.subr.mxu0 %v1698_v4  ;;  %v1695_v9 = vld [vmem:[%s2999_s1 + $0xa0] sm:$0xff]  ;;  %v1677_v10 = vld [vmem:[%s2999_s1 + $0x50] sm:$0xff]  ;;  %v1694_v11 = vld [vmem:[%s2999_s1 + $0x98] sm:$0xff] }
   0x5   :  { %1965 = vmatpush3.msra.mxu1 %v1681_v1  ;;  %2007 = vmatpush3.msra.mxu0 %v1698_v4  ;;  %v1676_v12 = vld [vmem:[%s2999_s1 + $0x48] sm:$0xff]  ;;  %v1693_v13 = vld [vmem:[%s2999_s1 + $0x90] sm:$0xff]  ;;  %v1675_v14 = vld [vmem:[%s2999_s1 + $0x40] sm:$0xff] }
   0x6   :  { %1966 = vmatprep.subr.mxu1 %v1680_v2  ;;  %2008 = vmatprep.subr.mxu0 %v1697_v6 }
   0x7   :  { %1967 = vmatpush3.msra.mxu1 %v1680_v2  ;;  %2009 = vmatpush3.msra.mxu0 %v1697_v6 }
   0x8   :  { %1968 = vmatprep.subr.mxu1 %v1679_v5  ;;  %2010 = vmatprep.subr.mxu0 %v1696_v7 }
   0x9   :  { %1969 = vmatpush3.msra.mxu1 %v1679_v5  ;;  %2011 = vmatpush3.msra.mxu0 %v1696_v7 }
   0xa   :  { %1970 = vmatprep.subr.mxu1 %v1678_v8  ;;  %2012 = vmatprep.subr.mxu0 %v1695_v9 }
   0xb   :  { %1971 = vmatpush3.msra.mxu1 %v1678_v8  ;;  %2013 = vmatpush3.msra.mxu0 %v1695_v9 }
   0xc   :  { %1972 = vmatprep.subr.mxu1 %v1677_v10  ;;  %2014 = vmatprep.subr.mxu0 %v1694_v11 }
   0xd   :  { %1973 = vmatpush3.msra.mxu1 %v1677_v10 }
   0xe   :  { %19 = vsyncpa [#allocation4], 0  ;;  %1974 = vmatprep.subr.mxu1 %v1676_v12  ;;  %2015 = vmatpush3.msra.mxu0 %v1694_v11  ;;  %v1692_v15 = vld [vmem:[%s2999_s1 + $0x88] sm:$0xff]  ;;  %v59_v17 = vld [vmem:[%s2999_s1 + $0x38] sm:$0xff]  ;;  %vm399_vm1 = vcmask 261120   ;;  %vm752_vm2 = vcmask 516096  }
   0xf   :  { %1975 = vmatpush3.msra.mxu1 %v1676_v12  ;;  %v61_v16 = vld [vmem:[%s2998_s0 + $0x9] sm:$0xff]  ;;  %2016 = vmatprep.subr.mxu0 %v1693_v13  ;;  %v62_v18 = vld [vmem:[%s2998_s0 + $0x19] sm:$0xff]  ;;  %v63_v22 = vld [vmem:[%s2998_s0 + $0x21] sm:$0xff]  ;;  %vm2292_vm3 = vmmov 0   ;;  %vm1048_vm4 = vcmask 130048   ;;  %vm1373_vm5 = vcmask 64512  }
  0x10   :  { %1976 = vmatprep.subr.mxu1 %v1675_v14  ;;  %2017 = vmatpush3.msra.mxu0 %v1693_v13  ;;  %v58_v19 = vld [vmem:[%s2999_s1 + $0x30] sm:$0xff]  ;;  %v1691_v20 = vld [vmem:[%s2999_s1 + $0x80] sm:$0xff]  ;;  %v57_v21 = vld [vmem:[%s2999_s1 + $0x28] sm:$0xff]  ;;  %s2293_s16 = smov [#allocation3]  }
  0x11   :  { %1977 = vmatpush3.msra.mxu1 %v1675_v14  ;;  %2018 = vmatprep.subr.mxu0 %v1692_v15  ;;  %v48_v23 = vld [vmem:[%s2998_s0] sm:$0xff]  ;;  %v55_v26 = vld [vmem:[%s2999_s1 + $0x18] sm:$0xff]  ;;  %v269_v27 = vld [vmem:[%s2998_s0 + $0xa] sm:$0xff]  ;;  %s1667_s17 = sshll.u32 %s2293_s16, 4  ;;  %s1668_s17 = int_to_ptr.vmem [resolvable:$true] %s1667_s17 }
  0x12   :  { %1979 = vmatmul.mubr.msk.f32.vlgmr.msra.gmra.mxu1 %vm73_vm0, %v61_v16  ;;  %1984 = vmatprep.subr.mxu1 %v59_v17  ;;  %v56_v24 = vld [vmem:[%s2999_s1 + $0x20] sm:$0xff]  ;;  %v54_v29 = vld [vmem:[%s2999_s1 + $0x10] sm:$0xff]  ;;  %v53_v30 = vld [vmem:[%s2999_s1 + $0x8] sm:$0xff]  ;;  %p2274_p1 = scmp.lt.s32.totalorder %s1668_s17, %s1668_s17 }
  0x13   :  { %1985 = vmatpush3.msra.mxu1 %v59_v17  ;;  %1981 = vmatprep.mubr.msk.f32.mxu1 %vm73_vm0, %v62_v18  ;;  %v268_v25 = vld [vmem:[%s2998_s0 + $0x2] sm:$0xff]  ;;  %v270_v28 = vld [vmem:[%s2998_s0 + $0x1a] sm:$0xff]  ;;  %v1706_v37 = vld [vmem:[%s3003_s5 + $0x10] sm:$0xff] }
  0x14   :  { %1986 = vmatprep.subr.mxu1 %v58_v19  ;;  %2019 = vmatpush3.msra.mxu0 %v1692_v15  ;;  %v271_v31 = vld [vmem:[%s2998_s0 + $0x22] sm:$0xff]  ;;  %v50_v34 = vld [vmem:[%s2998_s0 + $0x18] sm:$0xff]  ;;  %v1703_v55 = vld [vmem:[%s3000_s2] ss:$0 sm:$0xff] }
  0x15   :  { %1987 = vmatpush3.msra.mxu1 %v58_v19  ;;  %2020 = vmatprep.subr.mxu0 %v1691_v20  ;;  %v52_v32 = vld [vmem:[%s2999_s1] sm:$0xff]  ;;  %v49_v33 = vld [vmem:[%s2998_s0 + $0x8] sm:$0xff]  ;;  %v1707_v4 = vld [vmem:[%s3003_s5 + $0x18] sm:$0xff] }
  0x16   :  { %1988 = vmatprep.subr.mxu1 %v57_v21  ;;  %1982 = vmatmul.mubr.msk.f32.gmra.mxu1 %vm73_vm0, %v63_v22  ;;  %v51_v35 = vld [vmem:[%s2998_s0 + $0x20] sm:$0xff]  ;;  %v398_v3 = vld [vmem:[%s3003_s5 + $0x8] sm:$0xff]  ;;  %v582_v5 = vld [vmem:[%s3004_s6 + $0x78] sm:$0xff] }
  0x17   :  { %1989 = vmatpush3.msra.mxu1 %v57_v21  ;;  %2000 = vmatprep.mubr.msk.f32.mxu1 %vm73_vm0, %v48_v23  ;;  %v397_v36 = vld [vmem:[%s3003_s5] sm:$0xff]  ;;  %v1725_v6 = vld [vmem:[%s3004_s6 + $0xf8] sm:$0xff]  ;;  %v581_v7 = vld [vmem:[%s3004_s6 + $0x70] sm:$0xff] }
  0x18   :  { %1990 = vmatprep.subr.mxu1 %v56_v24  ;;  %2021 = vmatpush3.msra.mxu0 %v1691_v20  ;;  %v1724_v8 = vld [vmem:[%s3004_s6 + $0xf0] sm:$0xff]  ;;  %v580_v9 = vld [vmem:[%s3004_s6 + $0x68] sm:$0xff]  ;;  %v579_v11 = vld [vmem:[%s3004_s6 + $0x60] sm:$0xff] }
  0x19   :  { %1991 = vmatpush3.msra.mxu1 %v56_v24  ;;  %2022 = vmatprep.mubr.msk.f32.mxu0 %vm73_vm0, %v268_v25  ;;  %v1723_v10 = vld [vmem:[%s3004_s6 + $0xe8] sm:$0xff]  ;;  %v1722_v12 = vld [vmem:[%s3004_s6 + $0xe0] sm:$0xff]  ;;  %v578_v13 = vld [vmem:[%s3004_s6 + $0x58] sm:$0xff] }
  0x1a   :  { %1992 = vmatprep.subr.mxu1 %v55_v26  ;;  %2023 = vmatmul.mubr.msk.f32.vlgmr.msra.gmra.mxu0 %vm73_vm0, %v269_v27  ;;  %v1721_v14 = vld [vmem:[%s3004_s6 + $0xd8] sm:$0xff]  ;;  %v577_v15 = vld [vmem:[%s3004_s6 + $0x50] sm:$0xff]  ;;  %v576_v17 = vld [vmem:[%s3004_s6 + $0x48] sm:$0xff] }
  0x1b   :  { %1993 = vmatpush3.msra.mxu1 %v55_v26  ;;  %2025 = vmatprep.mubr.msk.f32.mxu0 %vm73_vm0, %v270_v28  ;;  %v1720_v16 = vld [vmem:[%s3004_s6 + $0xd0] sm:$0xff]  ;;  %v1719_v18 = vld [vmem:[%s3004_s6 + $0xc8] sm:$0xff]  ;;  %v575_v19 = vld [vmem:[%s3004_s6 + $0x40] sm:$0xff] }
  0x1c   :  { %1994 = vmatprep.subr.mxu1 %v54_v29  ;;  %v1718_v20 = vld [vmem:[%s3004_s6 + $0xc0] sm:$0xff]  ;;  %v574_v21 = vld [vmem:[%s3004_s6 + $0x38] sm:$0xff]  ;;  %v573_v23 = vld [vmem:[%s3004_s6 + $0x30] sm:$0xff] }
  0x1d   :  { %1995 = vmatpush3.msra.mxu1 %v54_v29  ;;  %v1717_v22 = vld [vmem:[%s3004_s6 + $0xb8] sm:$0xff]  ;;  %v1716_v24 = vld [vmem:[%s3004_s6 + $0xb0] sm:$0xff]  ;;  %v572_v25 = vld [vmem:[%s3004_s6 + $0x28] sm:$0xff] }
  0x1e   :  { %1996 = vmatprep.subr.mxu1 %v53_v30  ;;  %2026 = vmatmul.mubr.msk.f32.gmra.mxu0 %vm73_vm0, %v271_v31  ;;  %v1715_v26 = vld [vmem:[%s3004_s6 + $0xa8] sm:$0xff]  ;;  %v571_v27 = vld [vmem:[%s3004_s6 + $0x20] sm:$0xff]  ;;  %v570_v29 = vld [vmem:[%s3004_s6 + $0x18] sm:$0xff] }
  0x1f   :  { %1997 = vmatpush3.msra.mxu1 %v53_v30  ;;  %2036 = vmatprep.mubr.msk.f32.mxu0 %vm399_vm1, %v397_v36  ;;  %v1714_v28 = vld [vmem:[%s3004_s6 + $0xa0] sm:$0xff]  ;;  %v1713_v30 = vld [vmem:[%s3004_s6 + $0x98] sm:$0xff]  ;;  %v569_v31 = vld [vmem:[%s3004_s6 + $0x10] sm:$0xff] }
  0x20   :  { %1998 = vmatprep.subr.mxu1 %v52_v32  ;;  %v1710_v36 = vld [vmem:[%s3004_s6 + $0x80] sm:$0xff] }
  0x21   :  { %1999 = vmatpush3.msra.mxu1 %v52_v32  ;;  %v1712_v32 = vld [vmem:[%s3004_s6 + $0x90] sm:$0xff] }
  0x22   :  { %2001 = vmatmul.mubr.msk.f32.vlgmr.msra.gmra.mxu1 %vm73_vm0, %v49_v33  ;;  %v568_v33 = vld [vmem:[%s3004_s6 + $0x8] sm:$0xff] }
  0x23   :  { %2003 = vmatprep.mubr.msk.f32.mxu1 %vm73_vm0, %v50_v34  ;;  %v1711_v34 = vld [vmem:[%s3004_s6 + $0x88] sm:$0xff] }
  0x26   :  { %2004 = vmatmul.mubr.msk.f32.gmra.mxu1 %vm73_vm0, %v51_v35  ;;  %v567_v35 = vld [vmem:[%s3004_s6] sm:$0xff] }
  0x27   :  { %2047 = vmatprep.mubr.msk.f32.mxu1 %vm399_vm1, %v1706_v37  ;;  %v1733_v37 = vld [vmem:[%s3001_s3 + $0x78] sm:$0xff] }
  0xd2   :  { %v1980_v38 = vpop.f32.mrf.mxu1 }
  0xd4   :  { %v152_v39 = vpop.f32.mrf.mxu1 }
  0xd6   :  { %v1983_v40 = vpop.f32.mrf.mxu1 }
  0xd8   :  { %v162_v42 = vpop.f32.mrf.mxu1 }
  0xda   :  { %v2024_v41 = vpop.f32.mrf.mxu0 }
  0xdc   :  { %v359_v44 = vpop.f32.mrf.mxu0 }
  0xde   :  { %v2027_v48 = vpop.f32.mrf.mxu0 }
  0xe0   :  { %v369_v56 = vpop.f32.mrf.mxu0 }
  0xe2   :  { %v2002_v43 = vpop.f32.mrf.mxu1 }
  0xe3   :  { %v255_v46 = vadd.f32 %v2002_v43, %v1980_v38  ;;  %v768_v38 = vld [vmem:[%s3001_s3 + $0x38] sm:$0xff] }
  0xe4   :  { %v249_v45 = vpop.f32.mrf.mxu1 }
  0xe5   :  { %v250_v49 = vadd.f32 %v249_v45, %v152_v39  ;;  %v379_v52 = vadd.f32 %v2024_v41, %v255_v46  ;;  %v1732_v45 = vld [vmem:[%s3001_s3 + $0x70] sm:$0xff] }
  0xe6   :  { %v2005_v47 = vpop.f32.mrf.mxu1  ;;  %v767_v46 = vld [vmem:[%s3001_s3 + $0x30] sm:$0xff] }
  0xe7   :  { %v265_v50 = vadd.f32 %v2005_v47, %v1983_v40  ;;  %v378_v57 = vadd.f32 %v359_v44, %v250_v49  ;;  %v390_v60 = vadd.f32 %v1703_v55, %v379_v52  ;;  %v1731_v47 = vld [vmem:[%s3001_s3 + $0x68] sm:$0xff]  ;;  %v1730_v49 = vld [vmem:[%s3001_s3 + $0x60] sm:$0xff]  ;;  %v1729_v52 = vld [vmem:[%s3001_s3 + $0x58] sm:$0xff] }
  0xe8   :  { %v259_v51 = vpop.f32.mrf.mxu1 }
  0xe9   :  { %v381_v53 = vadd.f32 %v2027_v48, %v265_v50  ;;  %v260_v54 = vadd.f32 %v259_v51, %v162_v42  ;;  %v389_v63 = vadd.f32 %v1703_v55, %v378_v57  ;;  %v394_v1 = vmax.f32 %v390_v60, 0.0  ;;  %v766_v48 = vld [vmem:[%s3001_s3 + $0x28] sm:$0xff]  ;;  %v765_v50 = vld [vmem:[%s3001_s3 + $0x20] sm:$0xff]  ;;  %v1745_v60 = vld [vmem:[%s3001_s3 + $0xb8] sm:$0xff] }
  0xea   :  { %v2291_v51 = vmov 0.0   ;;  %v762_v57 = vld [vmem:[%s3001_s3 + $0x8] sm:$0xff] }
  0xeb   :  { %v392_v58 = vadd.f32 %v1703_v55, %v381_v53  ;;  %v380_v59 = vadd.f32 %v369_v56, %v260_v54  ;;  %v393_v2 = vmax.f32 %v389_v63, 0.0  ;;  %753 = vst.msk [vmem:[#allocation2] sm:$0x1] %vm752_vm2, %v2291_v51  ;;  %754 = vst.msk [vmem:[#allocation2 + $0x10] sm:$0x1] %vm752_vm2, %v2291_v51  ;;  %v764_v53 = vld [vmem:[%s3001_s3 + $0x18] sm:$0xff] }
  0xec   :  { %755 = vst.msk [vmem:[#allocation2 + $0x9] sm:$0x1] %vm752_vm2, %v2291_v51  ;;  %756 = vst.msk [vmem:[#allocation2 + $0x19] sm:$0x1] %vm752_vm2, %v2291_v51  ;;  %v1728_v54 = vld [vmem:[%s3001_s3 + $0x50] sm:$0xff]  ;;  %v1727_v56 = vld [vmem:[%s3001_s3 + $0x48] sm:$0xff] }
  0xed   :  { %v396_v61 = vmax.f32 %v392_v58, 0.0  ;;  %v391_v62 = vadd.f32 %v1703_v55, %v380_v59  ;;  %v763_v55 = vld [vmem:[%s3001_s3 + $0x10] sm:$0xff]  ;;  %v1726_v58 = vld [vmem:[%s3001_s3 + $0x40] sm:$0xff] }
  0xee   :  { %v761_v59 = vld [vmem:[%s3001_s3] sm:$0xff] }
  0xef   :  { %v395_v0 = vmax.f32 %v391_v62, 0.0  ;;  %2028 = vmatprep.subr.mxu0 %v396_v61  ;;  %2039 = vmatprep.subr.mxu1 %v396_v61 }
  0xf0   :  { %2029 = vmatpush3.msra.mxu0 %v396_v61  ;;  %2040 = vmatpush3.msra.mxu1 %v396_v61 }
  0xf1   :  { %2030 = vmatprep.subr.mxu0 %v395_v0  ;;  %2041 = vmatprep.subr.mxu1 %v395_v0 }
  0xf2   :  { %2031 = vmatpush3.msra.mxu0 %v395_v0  ;;  %2042 = vmatpush3.msra.mxu1 %v395_v0 }
  0xf3   :  { %2032 = vmatprep.subr.mxu0 %v394_v1  ;;  %2043 = vmatprep.subr.mxu1 %v394_v1 }
  0xf4   :  { %2033 = vmatpush3.msra.mxu0 %v394_v1  ;;  %2044 = vmatpush3.msra.mxu1 %v394_v1 }
  0xf5   :  { %2034 = vmatprep.subr.mxu0 %v393_v2  ;;  %2045 = vmatprep.subr.mxu1 %v393_v2 }
  0xf6   :  { %2035 = vmatpush3.msra.mxu0 %v393_v2  ;;  %2046 = vmatpush3.msra.mxu1 %v393_v2 }
  0xf7   :  { %2037 = vmatmul.mubr.msk.f32.vlgmr.msra.gmra.mxu0 %vm399_vm1, %v398_v3  ;;  %2048 = vmatmul.mubr.msk.f32.vlgmr.msra.gmra.mxu1 %vm399_vm1, %v1707_v4 }
  0xf8   :  { %2050 = vmatprep.subr.mxu0 %v582_v5  ;;  %2085 = vmatprep.subr.mxu1 %v1725_v6 }
  0xf9   :  { %2051 = vmatpush3.msra.mxu0 %v582_v5  ;;  %2086 = vmatpush3.msra.mxu1 %v1725_v6 }
  0xfa   :  { %2052 = vmatprep.subr.mxu0 %v581_v7  ;;  %2087 = vmatprep.subr.mxu1 %v1724_v8 }
  0xfb   :  { %2053 = vmatpush3.msra.mxu0 %v581_v7  ;;  %2088 = vmatpush3.msra.mxu1 %v1724_v8  ;;  %v1744_v7 = vld [vmem:[%s3001_s3 + $0xb0] sm:$0xff] }
  0xfc   :  { %2054 = vmatprep.subr.mxu0 %v580_v9  ;;  %2089 = vmatprep.subr.mxu1 %v1723_v10 }
  0xfd   :  { %2055 = vmatpush3.msra.mxu0 %v580_v9  ;;  %2090 = vmatpush3.msra.mxu1 %v1723_v10  ;;  %v1743_v9 = vld [vmem:[%s3001_s3 + $0xa8] sm:$0xff]  ;;  %v1742_v10 = vld [vmem:[%s3001_s3 + $0xa0] sm:$0xff] }
  0xfe   :  { %2056 = vmatprep.subr.mxu0 %v579_v11  ;;  %2091 = vmatprep.subr.mxu1 %v1722_v12 }
  0xff   :  { %2057 = vmatpush3.msra.mxu0 %v579_v11  ;;  %2092 = vmatpush3.msra.mxu1 %v1722_v12  ;;  %v1741_v11 = vld [vmem:[%s3001_s3 + $0x98] sm:$0xff]  ;;  %v1740_v12 = vld [vmem:[%s3001_s3 + $0x90] sm:$0xff] }
 0x100   :  { %2058 = vmatprep.subr.mxu0 %v578_v13  ;;  %2093 = vmatprep.subr.mxu1 %v1721_v14 }
 0x101   :  { %2059 = vmatpush3.msra.mxu0 %v578_v13  ;;  %2094 = vmatpush3.msra.mxu1 %v1721_v14  ;;  %v1739_v13 = vld [vmem:[%s3001_s3 + $0x88] sm:$0xff]  ;;  %v1738_v14 = vld [vmem:[%s3001_s3 + $0x80] sm:$0xff] }
 0x102   :  { %2060 = vmatprep.subr.mxu0 %v577_v15  ;;  %2095 = vmatprep.subr.mxu1 %v1720_v16 }
 0x103   :  { %2061 = vmatpush3.msra.mxu0 %v577_v15  ;;  %2096 = vmatpush3.msra.mxu1 %v1720_v16  ;;  %v1767_v16 = vld [vmem:[%s3006_s8 + $0xf8] sm:$0xff] }
 0x104   :  { %2062 = vmatprep.subr.mxu0 %v576_v17  ;;  %2097 = vmatprep.subr.mxu1 %v1719_v18 }
 0x105   :  { %2063 = vmatpush3.msra.mxu0 %v576_v17  ;;  %2098 = vmatpush3.msra.mxu1 %v1719_v18  ;;  %v1766_v17 = vld [vmem:[%s3006_s8 + $0xf0] sm:$0xff]  ;;  %v1765_v18 = vld [vmem:[%s3006_s8 + $0xe8] sm:$0xff] }
 0x106   :  { %2064 = vmatprep.subr.mxu0 %v575_v19  ;;  %2099 = vmatprep.subr.mxu1 %v1718_v20 }
 0x107   :  { %2065 = vmatpush3.msra.mxu0 %v575_v19  ;;  %2100 = vmatpush3.msra.mxu1 %v1718_v20  ;;  %v1764_v19 = vld [vmem:[%s3006_s8 + $0xe0] sm:$0xff]  ;;  %v1763_v20 = vld [vmem:[%s3006_s8 + $0xd8] sm:$0xff] }
 0x108   :  { %2066 = vmatprep.subr.mxu0 %v574_v21  ;;  %2101 = vmatprep.subr.mxu1 %v1717_v22 }
 0x109   :  { %2067 = vmatpush3.msra.mxu0 %v574_v21  ;;  %2102 = vmatpush3.msra.mxu1 %v1717_v22  ;;  %v1762_v21 = vld [vmem:[%s3006_s8 + $0xd0] sm:$0xff]  ;;  %v1761_v22 = vld [vmem:[%s3006_s8 + $0xc8] sm:$0xff] }
 0x10a   :  { %2068 = vmatprep.subr.mxu0 %v573_v23  ;;  %2103 = vmatprep.subr.mxu1 %v1716_v24 }
 0x10b   :  { %2069 = vmatpush3.msra.mxu0 %v573_v23  ;;  %2104 = vmatpush3.msra.mxu1 %v1716_v24  ;;  %v1760_v23 = vld [vmem:[%s3006_s8 + $0xc0] sm:$0xff]  ;;  %v1759_v24 = vld [vmem:[%s3006_s8 + $0xb8] sm:$0xff] }
 0x10c   :  { %2070 = vmatprep.subr.mxu0 %v572_v25  ;;  %2105 = vmatprep.subr.mxu1 %v1715_v26 }
 0x10d   :  { %2071 = vmatpush3.msra.mxu0 %v572_v25  ;;  %2106 = vmatpush3.msra.mxu1 %v1715_v26  ;;  %v1758_v25 = vld [vmem:[%s3006_s8 + $0xb0] sm:$0xff]  ;;  %v1757_v26 = vld [vmem:[%s3006_s8 + $0xa8] sm:$0xff] }
 0x10e   :  { %2072 = vmatprep.subr.mxu0 %v571_v27  ;;  %2107 = vmatprep.subr.mxu1 %v1714_v28 }
 0x10f   :  { %2073 = vmatpush3.msra.mxu0 %v571_v27  ;;  %2108 = vmatpush3.msra.mxu1 %v1714_v28  ;;  %v1756_v27 = vld [vmem:[%s3006_s8 + $0xa0] sm:$0xff] }
 0x110   :  { %2074 = vmatprep.subr.mxu0 %v570_v29  ;;  %2109 = vmatprep.subr.mxu1 %v1713_v30 }
 0x111   :  { %2075 = vmatpush3.msra.mxu0 %v570_v29  ;;  %2110 = vmatpush3.msra.mxu1 %v1713_v30 }
 0x112   :  { %2076 = vmatprep.subr.mxu0 %v569_v31  ;;  %2111 = vmatprep.subr.mxu1 %v1712_v32 }
 0x113   :  { %2077 = vmatpush3.msra.mxu0 %v569_v31  ;;  %2112 = vmatpush3.msra.mxu1 %v1712_v32 }
 0x114   :  { %2078 = vmatprep.subr.mxu0 %v568_v33  ;;  %2113 = vmatprep.subr.mxu1 %v1711_v34 }
 0x115   :  { %2079 = vmatpush3.msra.mxu0 %v568_v33  ;;  %2114 = vmatpush3.msra.mxu1 %v1711_v34  ;;  %v1748_v34 = vld [vmem:[%s3002_s4] ss:$0 sm:$0xff] }
 0x116   :  { %2080 = vmatprep.subr.mxu0 %v567_v35  ;;  %2115 = vmatprep.subr.mxu1 %v1710_v36 }
 0x117   :  { %2081 = vmatpush3.msra.mxu0 %v567_v35  ;;  %2116 = vmatpush3.msra.mxu1 %v1710_v36 }
 0x118   :  { %2120 = vmatprep.subr.mxu0 %v1733_v37  ;;  %2139 = vmatprep.subr.mxu1 %v768_v38 }
 0x1b7   :  { %v2038_v39 = vpop.f32.mrf.mxu0  ;;  %v2049_v40 = vpop.f32.mrf.mxu1 }
 0x1b8   :  { %v566_v44 = vmax.f32 %v2038_v39, %v2049_v40 }
 0x1b9   :  { %v472_v41 = vpop.f32.mrf.mxu0  ;;  %v556_v42 = vpop.f32.mrf.mxu1 }
 0x1ba   :  { %v565_v43 = vmax.f32 %v472_v41, %v556_v42 }
 0x1bc   :  { %2082 = vmatprep.mubr.f32.mxu0 %v565_v43  ;;  %2117 = vmatprep.mubr.f32.mxu1 %v565_v43  ;;  %v1047_v43 = vld [vmem:[%s3005_s7] sm:$0xff] }
 0x1bd   :  { %2083 = vmatmul.mubr.f32.vlgmr.msra.gmra.mxu0 %v566_v44  ;;  %2118 = vmatmul.mubr.f32.vlgmr.msra.gmra.mxu1 %v566_v44  ;;  %v1750_v44 = vld [vmem:[%s3005_s7 + $0x8] sm:$0xff] }
 0x1be   :  { %2121 = vmatpush3.msra.mxu0 %v1733_v37  ;;  %2140 = vmatpush3.msra.mxu1 %v768_v38 }
 0x1bf   :  { %2122 = vmatprep.subr.mxu0 %v1732_v45  ;;  %2141 = vmatprep.subr.mxu1 %v767_v46 }
 0x1c0   :  { %2123 = vmatpush3.msra.mxu0 %v1732_v45  ;;  %2142 = vmatpush3.msra.mxu1 %v767_v46  ;;  %v1213_v45 = vld [vmem:[%s3006_s8 + $0x78] sm:$0xff]  ;;  %v1212_v46 = vld [vmem:[%s3006_s8 + $0x70] sm:$0xff] }
 0x1c1   :  { %2124 = vmatprep.subr.mxu0 %v1731_v47  ;;  %2143 = vmatprep.subr.mxu1 %v766_v48 }
 0x1c2   :  { %2125 = vmatpush3.msra.mxu0 %v1731_v47  ;;  %2144 = vmatpush3.msra.mxu1 %v766_v48  ;;  %v1211_v47 = vld [vmem:[%s3006_s8 + $0x68] sm:$0xff]  ;;  %v1210_v48 = vld [vmem:[%s3006_s8 + $0x60] sm:$0xff] }
 0x1c3   :  { %2126 = vmatprep.subr.mxu0 %v1730_v49  ;;  %2145 = vmatprep.subr.mxu1 %v765_v50 }
 0x1c4   :  { %2127 = vmatpush3.msra.mxu0 %v1730_v49  ;;  %2146 = vmatpush3.msra.mxu1 %v765_v50  ;;  %v1209_v49 = vld [vmem:[%s3006_s8 + $0x58] sm:$0xff]  ;;  %v1208_v50 = vld [vmem:[%s3006_s8 + $0x50] sm:$0xff] }
 0x1c5   :  { %2128 = vmatprep.subr.mxu0 %v1729_v52  ;;  %2147 = vmatprep.subr.mxu1 %v764_v53 }
 0x1c6   :  { %2129 = vmatpush3.msra.mxu0 %v1729_v52  ;;  %2148 = vmatpush3.msra.mxu1 %v764_v53  ;;  %v1207_v52 = vld [vmem:[%s3006_s8 + $0x48] sm:$0xff]  ;;  %v1206_v53 = vld [vmem:[%s3006_s8 + $0x40] sm:$0xff] }
 0x1c7   :  { %2130 = vmatprep.subr.mxu0 %v1728_v54  ;;  %2149 = vmatprep.subr.mxu1 %v763_v55 }
 0x1c8   :  { %2131 = vmatpush3.msra.mxu0 %v1728_v54  ;;  %2150 = vmatpush3.msra.mxu1 %v763_v55  ;;  %v1205_v54 = vld [vmem:[%s3006_s8 + $0x38] sm:$0xff]  ;;  %v1204_v55 = vld [vmem:[%s3006_s8 + $0x30] sm:$0xff] }
 0x1c9   :  { %2132 = vmatprep.subr.mxu0 %v1727_v56  ;;  %2151 = vmatprep.subr.mxu1 %v762_v57 }
 0x1ca   :  { %2133 = vmatpush3.msra.mxu0 %v1727_v56  ;;  %2152 = vmatpush3.msra.mxu1 %v762_v57  ;;  %v1203_v56 = vld [vmem:[%s3006_s8 + $0x28] sm:$0xff]  ;;  %v1202_v57 = vld [vmem:[%s3006_s8 + $0x20] sm:$0xff] }
 0x1cb   :  { %2134 = vmatprep.subr.mxu0 %v1726_v58  ;;  %2153 = vmatprep.subr.mxu1 %v761_v59 }
 0x1cc   :  { %2135 = vmatpush3.msra.mxu0 %v1726_v58  ;;  %2154 = vmatpush3.msra.mxu1 %v761_v59  ;;  %v1201_v58 = vld [vmem:[%s3006_s8 + $0x18] sm:$0xff] }
 0x1cd   :  { %2158 = vmatprep.subr.mxu0 %v1745_v60  ;;  %2177 = vmatprep.subr.mxu1 %v2291_v51  ;;  %v1755_v59 = vld [vmem:[%s3006_s8 + $0x98] sm:$0xff] }
 0x27d   :  { %v2084_v61 = vpop.f32.mrf.mxu0  ;;  %v2119_v62 = vpop.f32.mrf.mxu1 }
 0x27e   :  { %v751_v63 = vmax.f32 %v2084_v61, %v2119_v62  ;;  %v1754_v61 = vld [vmem:[%s3006_s8 + $0x90] sm:$0xff]  ;;  %v1199_v62 = vld [vmem:[%s3006_s8 + $0x8] sm:$0xff] }
 0x27f   :  { %v649_v0 = vpop.f32.mrf.mxu0  ;;  %v741_v1 = vpop.f32.mrf.mxu1 }
 0x280   :  { %758 = vst.msk [vmem:[#allocation2 + $0x11] sm:$0xff] %vm73_vm0, %v751_v63  ;;  %v750_v2 = vmax.f32 %v649_v0, %v741_v1  ;;  %v1753_v63 = vld [vmem:[%s3006_s8 + $0x88] sm:$0xff]  ;;  %v1198_v0 = vld [vmem:[%s3006_s8] sm:$0xff] }
 0x281   :  { %v1752_v1 = vld [vmem:[%s3006_s8 + $0x80] sm:$0xff] }
 0x282   :  { %757 = vst.msk [vmem:[#allocation2 + $0x1] sm:$0xff] %vm73_vm0, %v750_v2 }
 0x287   :  { %v770_v5 = vld [vmem:[#allocation2 + $0x11] sm:$0xff] }
 0x288   :  { %v760_v6 = vld [vmem:[#allocation2 + $0x10] sm:$0xff] }
 0x289   :  { %v769_v3 = vld [vmem:[#allocation2 + $0x1] sm:$0xff]  ;;  %v943_v15 = vld [vmem:[#allocation2 + $0x12] sm:$0xff] }
 0x28a   :  { %v759_v4 = vld [vmem:[#allocation2] sm:$0xff]  ;;  %2136 = vmatprep.mubr.msk.f32.mxu0 %vm73_vm0, %v769_v3 }
 0x28b   :  { %2155 = vmatprep.mubr.msk.f32.mxu1 %vm73_vm0, %v759_v4  ;;  %2137 = vmatmul.mubr.msk.f32.vlgmr.msra.gmra.mxu0 %vm73_vm0, %v770_v5  ;;  %v942_v8 = vld [vmem:[#allocation2 + $0x2] sm:$0xff] }
 0x28c   :  { %2156 = vmatmul.mubr.msk.f32.vlgmr.msra.gmra.mxu1 %vm73_vm0, %v760_v6  ;;  %2159 = vmatpush3.msra.mxu0 %v1745_v60  ;;  %v1200_v60 = vld [vmem:[%s3006_s8 + $0x10] sm:$0xff] }
 0x28d   :  { %2174 = vmatprep.mubr.msk.f32.mxu0 %vm73_vm0, %v942_v8  ;;  %2160 = vmatprep.subr.mxu0 %v1744_v7 }
 0x28e   :  { %2161 = vmatpush3.msra.mxu0 %v1744_v7  ;;  %2181 = vmatprep.mubr.msk.f32.mxu1 %vm2292_vm3, %v2291_v51 }
 0x28f   :  { %2162 = vmatprep.subr.mxu0 %v1743_v9 }
 0x290   :  { %2163 = vmatpush3.msra.mxu0 %v1743_v9 }
 0x291   :  { %2164 = vmatprep.subr.mxu0 %v1742_v10 }
 0x292   :  { %2165 = vmatpush3.msra.mxu0 %v1742_v10  ;;  %v1372_v10 = vld [vmem:[%s3007_s9] sm:$0x3] }
 0x293   :  { %2166 = vmatprep.subr.mxu0 %v1741_v11 }
 0x294   :  { %2167 = vmatpush3.msra.mxu0 %v1741_v11  ;;  %v1462_v11 = vld [vmem:[%s3008_s10 + $0x78] sm:$0xff] }
 0x295   :  { %2168 = vmatprep.subr.mxu0 %v1740_v12 }
 0x296   :  { %2169 = vmatpush3.msra.mxu0 %v1740_v12 }
 0x297   :  { %2170 = vmatprep.subr.mxu0 %v1739_v13 }
 0x298   :  { %2171 = vmatpush3.msra.mxu0 %v1739_v13 }
 0x299   :  { %2172 = vmatprep.subr.mxu0 %v1738_v14 }
 0x29a   :  { %2173 = vmatpush3.msra.mxu0 %v1738_v14  ;;  %v1461_v14 = vld [vmem:[%s3008_s10 + $0x70] sm:$0xff] }
 0x29b   :  { %2175 = vmatmul.mubr.msk.f32.vlgmr.msra.gmra.mxu0 %vm73_vm0, %v943_v15  ;;  %2226 = vmatprep.subr.mxu0 %v2291_v51  ;;  %v1460_v15 = vld [vmem:[%s3008_s10 + $0x68] sm:$0xff] }
 0x29c   :  { %2258 = vmatprep.mubr.msk.f32.mxu0 %vm2292_vm3, %v2291_v51  ;;  %2227 = vmatpush3.msra.mxu0 %v1767_v16  ;;  %v1459_v16 = vld [vmem:[%s3008_s10 + $0x60] sm:$0xff] }
 0x29d   :  { %2228 = vmatprep.subr.mxu0 %v2291_v51 }
 0x29e   :  { %2229 = vmatpush3.msra.mxu0 %v1766_v17  ;;  %v1458_v17 = vld [vmem:[%s3008_s10 + $0x58] sm:$0xff] }
 0x29f   :  { %2230 = vmatprep.subr.mxu0 %v2291_v51 }
 0x2a0   :  { %2231 = vmatpush3.msra.mxu0 %v1765_v18  ;;  %v1457_v18 = vld [vmem:[%s3008_s10 + $0x50] sm:$0xff] }
 0x2a1   :  { %2232 = vmatprep.subr.mxu0 %v2291_v51 }
 0x2a2   :  { %2233 = vmatpush3.msra.mxu0 %v1764_v19  ;;  %v1456_v19 = vld [vmem:[%s3008_s10 + $0x48] sm:$0xff] }
 0x2a3   :  { %2234 = vmatprep.subr.mxu0 %v2291_v51 }
 0x2a4   :  { %2235 = vmatpush3.msra.mxu0 %v1763_v20  ;;  %v1455_v20 = vld [vmem:[%s3008_s10 + $0x40] sm:$0xff] }
 0x2a5   :  { %2236 = vmatprep.subr.mxu0 %v2291_v51 }
 0x2a6   :  { %2237 = vmatpush3.msra.mxu0 %v1762_v21  ;;  %v1453_v21 = vld [vmem:[%s3008_s10 + $0x30] sm:$0xff] }
 0x2a7   :  { %2238 = vmatprep.subr.mxu0 %v2291_v51 }
 0x2a8   :  { %2239 = vmatpush3.msra.mxu0 %v1761_v22  ;;  %v1452_v22 = vld [vmem:[%s3008_s10 + $0x28] sm:$0xff] }
 0x2a9   :  { %2240 = vmatprep.subr.mxu0 %v2291_v51 }
 0x2aa   :  { %2241 = vmatpush3.msra.mxu0 %v1760_v23  ;;  %v1451_v23 = vld [vmem:[%s3008_s10 + $0x20] sm:$0xff] }
 0x2ab   :  { %2242 = vmatprep.subr.mxu0 %v2291_v51 }
 0x2ac   :  { %2243 = vmatpush3.msra.mxu0 %v1759_v24  ;;  %v1450_v24 = vld [vmem:[%s3008_s10 + $0x18] sm:$0xff] }
 0x2ad   :  { %2244 = vmatprep.subr.mxu0 %v2291_v51 }
 0x2ae   :  { %2245 = vmatpush3.msra.mxu0 %v1758_v25  ;;  %v1449_v25 = vld [vmem:[%s3008_s10 + $0x10] sm:$0xff] }
 0x2af   :  { %2246 = vmatprep.subr.mxu0 %v2291_v51 }
 0x2b0   :  { %2247 = vmatpush3.msra.mxu0 %v1757_v26  ;;  %v1448_v26 = vld [vmem:[%s3008_s10 + $0x8] sm:$0xff] }
 0x2b1   :  { %2248 = vmatprep.subr.mxu0 %v2291_v51 }
 0x2b2   :  { %2249 = vmatpush3.msra.mxu0 %v1756_v27  ;;  %v1447_v27 = vld [vmem:[%s3008_s10] sm:$0xff] }
 0x2b3   :  { %2250 = vmatprep.subr.mxu0 %v2291_v51 }
 0x2b4   :  { %2251 = vmatpush3.msra.mxu0 %v1755_v59  ;;  %v1568_v59 = vld [vmem:[%s3010_s12 + $0x88] sm:$0xff] }
 0x2b5   :  { %2252 = vmatprep.subr.mxu0 %v2291_v51 }
 0x2b6   :  { %2253 = vmatpush3.msra.mxu0 %v1754_v61  ;;  %v1567_v61 = vld [vmem:[%s3010_s12 + $0x80] sm:$0xff] }
 0x2b7   :  { %2254 = vmatprep.subr.mxu0 %v2291_v51 }
 0x2b8   :  { %2255 = vmatpush3.msra.mxu0 %v1753_v63  ;;  %v1465_v63 = vlaneseq }
 0x2b9   :  { %2256 = vmatprep.subr.mxu0 %v2291_v51 }
 0x2ba   :  { %2257 = vmatpush3.msra.mxu0 %v1752_v1 }
 0x34b   :  { %v2138_v28 = vpop.f32.mrf.mxu0 }
 0x34c   :  { %v2157_v29 = vpop.f32.mrf.mxu1 }
 0x34d   :  { %v852_v30 = vpop.f32.mrf.mxu0  ;;  %v939_v32 = vadd.f32 %v2157_v29, %v2138_v28  ;;  %v1582_v28 = vld [vmem:[%s3010_s12 + $0xf8] sm:$0xff] }
 0x34e   :  { %v933_v31 = vpop.f32.mrf.mxu1  ;;  %v1566_v29 = vld [vmem:[%s3010_s12 + $0x78] sm:$0xff]  ;;  %1927 = vmatprep.subr.mxu0 %v1582_v28 }
 0x34f   :  { %v934_v35 = vadd.f32 %v933_v31, %v852_v30  ;;  %v1581_v30 = vld [vmem:[%s3010_s12 + $0xf0] sm:$0xff] }
 0x350   :  { %v1565_v31 = vld [vmem:[%s3010_s12 + $0x70] sm:$0xff] }
 0x35b   :  { %v2176_v33 = vpop.f32.mrf.mxu0 }
 0x35c   :  { %v1035_v36 = vadd.f32 %v2176_v33, %v939_v32  ;;  %v1580_v32 = vld [vmem:[%s3010_s12 + $0xe8] sm:$0xff] }
 0x35d   :  { %v1025_v37 = vpop.f32.mrf.mxu0  ;;  %v1564_v33 = vld [vmem:[%s3010_s12 + $0x68] sm:$0xff] }
 0x35e   :  { %v1044_v38 = vadd.f32 %v1748_v34, %v1035_v36  ;;  %v1034_v39 = vadd.f32 %v1025_v37, %v934_v35  ;;  %v1563_v35 = vld [vmem:[%s3010_s12 + $0x60] sm:$0xff]  ;;  %v1578_v36 = vld [vmem:[%s3010_s12 + $0xd8] sm:$0xff] }
 0x35f   :  { %v1562_v37 = vld [vmem:[%s3010_s12 + $0x58] sm:$0xff] }
 0x360   :  { %v1046_v40 = vmax.f32 %v1044_v38, 0.0  ;;  %v1043_v41 = vadd.f32 %v1748_v34, %v1034_v39  ;;  %v1579_v34 = vld [vmem:[%s3010_s12 + $0xe0] sm:$0xff]  ;;  %v1577_v38 = vld [vmem:[%s3010_s12 + $0xd0] sm:$0xff] }
 0x361   :  { %v1561_v39 = vld [vmem:[%s3010_s12 + $0x50] sm:$0xff] }
 0x362   :  { %v1045_v42 = vmax.f32 %v1043_v41, 0.0  ;;  %2178 = vmatpush3.msra.mxu1 %v1046_v40  ;;  %v1560_v41 = vld [vmem:[%s3010_s12 + $0x48] sm:$0xff] }
 0x363   :  { %2179 = vmatprep.subr.mxu1 %v2291_v51 }
 0x364   :  { %2180 = vmatpush3.msra.mxu1 %v1045_v42 }
 0x365   :  { %2182 = vmatmul.mubr.msk.f32.vlgmr.msra.gmra.mxu1 %vm1048_vm4, %v1047_v43  ;;  %2184 = vmatprep.subr.mxu1 %v2291_v51  ;;  %v1559_v43 = vld [vmem:[%s3010_s12 + $0x40] sm:$0xff] }
 0x366   :  { %2185 = vmatpush3.msra.mxu1 %v1046_v40  ;;  %2188 = vmatprep.mubr.msk.f32.mxu1 %vm2292_vm3, %v2291_v51  ;;  %v1576_v40 = vld [vmem:[%s3010_s12 + $0xc8] sm:$0xff] }
 0x367   :  { %2186 = vmatprep.subr.mxu1 %v2291_v51 }
 0x368   :  { %2187 = vmatpush3.msra.mxu1 %v1045_v42  ;;  %v1575_v42 = vld [vmem:[%s3010_s12 + $0xc0] sm:$0xff] }
 0x369   :  { %2189 = vmatmul.mubr.msk.f32.vlgmr.msra.gmra.mxu1 %vm1048_vm4, %v1750_v44  ;;  %2191 = vmatprep.subr.mxu1 %v2291_v51  ;;  %v1574_v44 = vld [vmem:[%s3010_s12 + $0xb8] sm:$0xff] }
 0x36a   :  { %2192 = vmatpush3.msra.mxu1 %v1213_v45  ;;  %2223 = vmatprep.mubr.msk.f32.mxu1 %vm2292_vm3, %v2291_v51  ;;  %v1558_v45 = vld [vmem:[%s3010_s12 + $0x38] sm:$0xff] }
 0x36b   :  { %2193 = vmatprep.subr.mxu1 %v2291_v51 }
 0x36c   :  { %2194 = vmatpush3.msra.mxu1 %v1212_v46  ;;  %v1573_v46 = vld [vmem:[%s3010_s12 + $0xb0] sm:$0xff] }
 0x36d   :  { %2195 = vmatprep.subr.mxu1 %v2291_v51 }
 0x36e   :  { %2196 = vmatpush3.msra.mxu1 %v1211_v47  ;;  %v1557_v47 = vld [vmem:[%s3010_s12 + $0x30] sm:$0xff] }
 0x36f   :  { %2197 = vmatprep.subr.mxu1 %v2291_v51 }
 0x370   :  { %2198 = vmatpush3.msra.mxu1 %v1210_v48  ;;  %v1572_v48 = vld [vmem:[%s3010_s12 + $0xa8] sm:$0xff] }
 0x371   :  { %2199 = vmatprep.subr.mxu1 %v2291_v51 }
 0x372   :  { %2200 = vmatpush3.msra.mxu1 %v1209_v49  ;;  %v1556_v49 = vld [vmem:[%s3010_s12 + $0x28] sm:$0xff] }
 0x373   :  { %2201 = vmatprep.subr.mxu1 %v2291_v51 }
 0x374   :  { %2202 = vmatpush3.msra.mxu1 %v1208_v50  ;;  %v1571_v50 = vld [vmem:[%s3010_s12 + $0xa0] sm:$0xff] }
 0x375   :  { %2203 = vmatprep.subr.mxu1 %v2291_v51 }
 0x376   :  { %2204 = vmatpush3.msra.mxu1 %v1207_v52  ;;  %v1555_v52 = vld [vmem:[%s3010_s12 + $0x20] sm:$0xff] }
 0x377   :  { %2205 = vmatprep.subr.mxu1 %v2291_v51 }
 0x378   :  { %2206 = vmatpush3.msra.mxu1 %v1206_v53 }
 0x379   :  { %2207 = vmatprep.subr.mxu1 %v2291_v51 }
 0x37a   :  { %2208 = vmatpush3.msra.mxu1 %v1205_v54 }
 0x37b   :  { %2209 = vmatprep.subr.mxu1 %v2291_v51 }
 0x37c   :  { %2210 = vmatpush3.msra.mxu1 %v1204_v55  ;;  %v1570_v55 = vld [vmem:[%s3010_s12 + $0x98] sm:$0xff] }
 0x37d   :  { %2211 = vmatprep.subr.mxu1 %v2291_v51 }
 0x37e   :  { %2212 = vmatpush3.msra.mxu1 %v1203_v56  ;;  %v1554_v56 = vld [vmem:[%s3010_s12 + $0x18] sm:$0xff] }
 0x37f   :  { %2213 = vmatprep.subr.mxu1 %v2291_v51 }
 0x380   :  { %2214 = vmatpush3.msra.mxu1 %v1202_v57  ;;  %v1569_v57 = vld [vmem:[%s3010_s12 + $0x90] sm:$0xff] }
 0x381   :  { %2215 = vmatprep.subr.mxu1 %v2291_v51 }
 0x382   :  { %2216 = vmatpush3.msra.mxu1 %v1201_v58  ;;  %v1553_v58 = vld [vmem:[%s3010_s12 + $0x10] sm:$0xff] }
 0x383   :  { %2217 = vmatprep.subr.mxu1 %v2291_v51 }
 0x384   :  { %2218 = vmatpush3.msra.mxu1 %v1200_v60  ;;  %v1552_v60 = vld [vmem:[%s3010_s12 + $0x8] sm:$0xff] }
 0x385   :  { %2219 = vmatprep.subr.mxu1 %v2291_v51 }
 0x386   :  { %2220 = vmatpush3.msra.mxu1 %v1199_v62  ;;  %v1551_v62 = vld [vmem:[%s3010_s12] sm:$0xff] }
 0x387   :  { %2221 = vmatprep.subr.mxu1 %v2291_v51 }
 0x388   :  { %2222 = vmatpush3.msra.mxu1 %v1198_v0  ;;  %v1466_v0 = vshrl.u32 %v1465_v63, 7 }
 0x389   :  { %2261 = vmatprep.subr.mxu1 %v2291_v51 }
 0x38a   :  { %v1467_v1 = vsub.s32 0, %v1466_v0 }
 0x425   :  { %v1118_v2 = vpop.f32.mrf.mxu1 }
 0x427   :  { %v2183_v3 = vpop.f32.mrf.mxu1 }
 0x428   :  { %v1471_v3 = vsub.s32 1, %v1466_v0 }
 0x429   :  { %v1193_v4 = vpop.f32.mrf.mxu1 }
 0x42a   :  { %v1197_v5 = vmax.f32 %v1118_v2, %v1193_v4  ;;  %v1463_v2 = vld [vmem:[%s3009_s11] sm:$0x3]  ;;  %s2269_s11 = scalar_lea.vmem %s1668_s17, 32 }
 0x42b   :  { %v2190_v6 = vpop.f32.mrf.mxu1  ;;  %v1468_v4 = vrot.slane %v1463_v2, %v1467_v1  ;;  %p2270_p0 = scmp.ne.s32.totalorder %s1668_s17, %s2269_s11  ;;  %p2275_p2 = scmp.lt.s32.totalorder %s2269_s11, %s2269_s11 }
 0x42c   :  { %2224 = vmatmul.mubr.f32.vlgmr.msra.gmra.mxu1 %v1197_v5  ;;  %2259 = vmatmul.mubr.f32.vlgmr.msra.gmra.mxu0 %v1197_v5  ;;  %v1472_v5 = vrot.slane %v1463_v2, %v1471_v3 }
 0x42d   :  { %2263 = vmatprep.mubr.msk.f32.mxu1 %vm2292_vm3, %v2291_v51  ;;  %1928 = vmatpush3.msra.mxu0 %v1566_v29  ;;  %p2276_p3 = por %p2275_p2, %p2274_p1 }
 0x42e   :  { %1929 = vmatprep.subr.mxu0 %v1581_v30 }
 0x42f   :  { %1930 = vmatpush3.msra.mxu0 %v1565_v31  ;;  %p2277_p4 = pnand %p2276_p3, %p2270_p0 }
 0x430   :  { %1931 = vmatprep.subr.mxu0 %v1580_v32 }
 0x431   :  { %1932 = vmatpush3.msra.mxu0 %v1564_v33 }
 0x432   :  { %1933 = vmatprep.subr.mxu0 %v1579_v34 }
 0x433   :  { %1934 = vmatpush3.msra.mxu0 %v1563_v35 }
 0x434   :  { %1935 = vmatprep.subr.mxu0 %v1578_v36 }
 0x435   :  { %1936 = vmatpush3.msra.mxu0 %v1562_v37 }
 0x436   :  { %1937 = vmatprep.subr.mxu0 %v1577_v38 }
 0x437   :  { %1938 = vmatpush3.msra.mxu0 %v1561_v39 }
 0x438   :  { %1939 = vmatprep.subr.mxu0 %v1576_v40 }
 0x439   :  { %1940 = vmatpush3.msra.mxu0 %v1560_v41 }
 0x43a   :  { %1941 = vmatprep.subr.mxu0 %v1575_v42 }
 0x43b   :  { %1942 = vmatpush3.msra.mxu0 %v1559_v43 }
 0x43c   :  { %1943 = vmatprep.subr.mxu0 %v1574_v44 }
 0x43d   :  { %1944 = vmatpush3.msra.mxu0 %v1558_v45 }
 0x43e   :  { %1945 = vmatprep.subr.mxu0 %v1573_v46 }
 0x43f   :  { %1946 = vmatpush3.msra.mxu0 %v1557_v47 }
 0x440   :  { %1947 = vmatprep.subr.mxu0 %v1572_v48 }
 0x441   :  { %1948 = vmatpush3.msra.mxu0 %v1556_v49 }
 0x442   :  { %1949 = vmatprep.subr.mxu0 %v1571_v50 }
 0x443   :  { %1950 = vmatpush3.msra.mxu0 %v1555_v52 }
 0x444   :  { %1951 = vmatprep.subr.mxu0 %v1570_v55 }
 0x445   :  { %1952 = vmatpush3.msra.mxu0 %v1554_v56 }
 0x446   :  { %1953 = vmatprep.subr.mxu0 %v1569_v57 }
 0x447   :  { %1954 = vmatpush3.msra.mxu0 %v1553_v58 }
 0x448   :  { %1955 = vmatprep.subr.mxu0 %v1568_v59 }
 0x449   :  { %1956 = vmatpush3.msra.mxu0 %v1552_v60 }
 0x44a   :  { %1957 = vmatprep.subr.mxu0 %v1567_v61 }
 0x44b   :  { %1958 = vmatpush3.msra.mxu0 %v1551_v62 }
 0x4ec   :  { %v1280_v7 = vpop.f32.mrf.mxu1  ;;  %v1367_v8 = vpop.f32.mrf.mxu0 }
 0x4ed   :  { %v1371_v9 = vmax.f32 %v1280_v7, %v1367_v8 }
 0x4ee   :  { %v2225_v12 = vpop.f32.mrf.mxu1  ;;  %v2260_v13 = vpop.f32.mrf.mxu0 }
 0x4ef   :  { %2262 = vmatpush3.msra.mxu1 %v1371_v9 }
 0x4f0   :  { %2264 = vmatmul.mubr.msk.f32.vlgmr.msra.gmra.mxu1 %vm1373_vm5, %v1372_v10  ;;  %1494 = vmatprep.subr.mxu1 %v1462_v11 }
 0x4f1   :  { %1495 = vmatpush1.msra.mxu1 %v1461_v14  ;;  %1542 = vmatprep.mubr.f32.mxu1 %v2291_v51  ;;  %v1454_v51 = vld [vmem:[%s3008_s10 + $0x38] sm:$0xff]  ;;  %v1770_v14 = vld [vmem:[%s3011_s13] ss:$0 sm:$0xff] }
 0x4f2   :  { %1496 = vmatprep.subr.mxu1 %v1460_v15 }
 0x4f3   :  { %1497 = vmatpush1.msra.mxu1 %v1459_v16 }
 0x4f4   :  { %1498 = vmatprep.subr.mxu1 %v1458_v17 }
 0x4f5   :  { %1499 = vmatpush1.msra.mxu1 %v1457_v18 }
 0x4f6   :  { %1500 = vmatprep.subr.mxu1 %v1456_v19 }
 0x4f7   :  { %1501 = vmatpush1.msra.mxu1 %v1455_v20 }
 0x4f8   :  { %1502 = vmatprep.subr.mxu1 %v1454_v51 }
 0x4f9   :  { %1503 = vmatpush1.msra.mxu1 %v1453_v21 }
 0x4fa   :  { %1504 = vmatprep.subr.mxu1 %v1452_v22 }
 0x4fb   :  { %1505 = vmatpush1.msra.mxu1 %v1451_v23 }
 0x4fc   :  { %1506 = vmatprep.subr.mxu1 %v1450_v24 }
 0x4fd   :  { %1507 = vmatpush1.msra.mxu1 %v1449_v25 }
 0x4fe   :  { %1508 = vmatprep.subr.mxu1 %v1448_v26 }
 0x4ff   :  { %1509 = vmatpush1.msra.mxu1 %v1447_v27 }
 0x5b0   :  { %v1443_v53 = vpop.f32.mrf.mxu1 }
 0x5b1   :  { %1769 = vmatmul.mubr.msk.f32.vlgmr.msra.gmra.mxu1 %vm73_vm0, %v1443_v53 }
 0x5b2   :  { %v2265_v54 = vpop.f32.mrf.mxu1 }
 0x671   :  { %v1544_v6 = vpop.f32.mrf.mxu1 }
 0x672   :  { %v1545_v7 = vadd.f32 %v1544_v6, %v1468_v4 }
 0x673   :  { %v1546_v8 = vpop.f32.mrf.mxu1 }
 0x674   :  { %v1547_v9 = vadd.f32 %v1546_v8, %v1472_v5  ;;  %v1549_v11 = vmax.f32 %v1545_v7, 0.0 }
 0x676   :  { %v1550_v10 = vmax.f32 %v1547_v9, 0.0 }
 0x678   :  { %1654 = vmatprep.mubr.f32.mxu0 %v1550_v10 }
 0x679   :  { %1655 = vmatmul.mubr.f32.vlgmr.msra.gmra.mxu0 %v1549_v11 }
 0x739   :  { %v1959_v12 = vpop.f32.mrf.mxu0 }
 0x73b   :  { %v1960_v13 = vpop.f32.mrf.mxu0 }
 0x73c   :  { %v1961_v15 = vadd.f32 %v1960_v13, %v1959_v12 }
 0x73e   :  { %v1657_v16 = vadd.f32 %v1961_v15, %v1770_v14 }
 0x740   :  { %1660 = vst [vmem:[#allocation3] sm:$0x3] %v1657_v16 }
 0x741   :  { %2280 = shalt.err (!%p2277_p4)
}
 0x742   :  { %1670 = dma.vmem_to_hbm [thread:$0]  %s1668_s17, 32, %s3012_s14, [#allocation4]  }
 0x743   :  { %2289 = dma.done.wait [#allocation4], 32  }
 0x744   :  { %2290 = vsyncadd [#allocation4], 4294967264 }
 0x745   :  { %1674 = vsyncpa [#allocation4], 1 }

</bundles_post_ra>
